<compile_context>
chip_gen: v6e
topology: v6e:2x2x1
jax: 0.10.0
libtpu: 0.0.40
codegen_flags: <defaults>
</compile_context>

<pallas_src>
import functools
import math

import jax
import jax.numpy as jnp
from jax.experimental import pallas as pl
from jax.experimental.pallas import tpu as pltpu


# ----------------------------- in-kernel helpers -----------------------------

def _layernorm(x, g, b, eps):
    mu = jnp.mean(x, axis=-1, keepdims=True)
    xc = x - mu
    var = jnp.mean(xc * xc, axis=-1, keepdims=True)
    return xc * jax.lax.rsqrt(var + eps) * g + b


def _gelu(x):  # exact (erf) GELU, as in BERT
    return 0.5 * x * (1.0 + jax.lax.erf(x * (1.0 / math.sqrt(2.0))))


# ----------------------------- fused forward kernel -----------------------------

def _fused_bert_kernel(emb_ref, mask_ref, emb_ln_g_ref, emb_ln_b_ref,
                       qkv_w_ref, qkv_b_ref, o_w_ref, o_b_ref,
                       ln1_g_ref, ln1_b_ref, w1_ref, b1_ref, w2_ref, b2_ref,
                       ln2_g_ref, ln2_b_ref,
                       pooler_w_ref, pooler_b_ref, fc_w_ref, fc_b_ref,
                       out_ref, *, num_layers, num_heads, head_dim, scale, eps):
    """One grid step == one batch element.  emb_ref block: [1, S, H]."""
    H = emb_ref.shape[2]

    x = emb_ref[0]            # [S, H]
    mask = mask_ref[0]        # [1, S] additive mask (broadcast over query rows)

    # ---- embedding LayerNorm (no zeros residual) ----
    x = _layernorm(x, emb_ln_g_ref[...], emb_ln_b_ref[...], eps)

    # ---- encoder layers (static unrolled; weights VMEM-resident) ----
    for l in range(num_layers):
        # fused QKV projection: [S, 3H]
        qkv = jnp.dot(x, qkv_w_ref[l], preferred_element_type=jnp.float32) + qkv_b_ref[l]

        ctx_heads = []
        for h in range(num_heads):
            lo = h * head_dim
            q = qkv[:, lo:lo + head_dim]                    # [S, Dh]
            k = qkv[:, H + lo:H + lo + head_dim]            # [S, Dh]
            v = qkv[:, 2 * H + lo:2 * H + lo + head_dim]    # [S, Dh]
            # scores = q @ k^T (contraction via dot_general, no explicit transpose)
            s = jax.lax.dot_general(q, k, (((1,), (1,)), ((), ())),
                                    preferred_element_type=jnp.float32)
            s = s * scale + mask                            # [S, S]
            s = s - jnp.max(s, axis=-1, keepdims=True)
            p = jnp.exp(s)
            p = p * pl.reciprocal(jnp.sum(p, axis=-1, keepdims=True), approx=True)
            ctx_heads.append(jnp.dot(p, v, preferred_element_type=jnp.float32))
        ctx = jnp.concatenate(ctx_heads, axis=1)            # [S, H]

        attn = jnp.dot(ctx, o_w_ref[l], preferred_element_type=jnp.float32) + o_b_ref[l]
        x = _layernorm(attn + x, ln1_g_ref[l], ln1_b_ref[l], eps)

        h1 = jnp.dot(x, w1_ref[l], preferred_element_type=jnp.float32) + b1_ref[l]
        h1 = _gelu(h1)
        ffn = jnp.dot(h1, w2_ref[l], preferred_element_type=jnp.float32) + b2_ref[l]
        x = _layernorm(ffn + x, ln2_g_ref[l], ln2_b_ref[l], eps)

    # ---- pooler: dense(tanh) on the [CLS] token of this batch ----
    cls = x[0:1, :]                                          # [1, H]
    pooled = jnp.tanh(jnp.dot(cls, pooler_w_ref[...],
                              preferred_element_type=jnp.float32) + pooler_b_ref[...])

    # TODO(synk): dropout(p=0.3) is an eval-mode identity; training-mode PRNG masking not implemented.

    # ---- classification head ----
    logit = jnp.dot(pooled, fc_w_ref[...], preferred_element_type=jnp.float32) + fc_b_ref[...]
    out_ref[...] = logit.reshape(out_ref.shape).astype(out_ref.dtype)


# ----------------------------- parameter setup -----------------------------

CONFIG = dict(
    vocab_size=30,
    hidden_size=32,
    num_layers=2,
    num_heads=2,
    intermediate_size=64,
    max_position_embeddings=32,
    type_vocab_size=2,
)


def init_params(key, cfg):
    H = cfg["hidden_size"]
    I = cfg["intermediate_size"]
    std = 0.02

    def nrm(k, shape):
        return std * jax.random.normal(k, shape, dtype=jnp.float32)

    keys = iter(jax.random.split(key, 8 + 12 * cfg["num_layers"]))
    params = {
        "word_emb": nrm(next(keys), (cfg["vocab_size"], H)),
        "pos_emb": nrm(next(keys), (cfg["max_position_embeddings"], H)),
        "type_emb": nrm(next(keys), (cfg["type_vocab_size"], H)),
        "emb_ln_g": jnp.ones((H,), jnp.float32),
        "emb_ln_b": jnp.zeros((H,), jnp.float32),
        "pooler_w": nrm(next(keys), (H, H)),
        "pooler_b": jnp.zeros((H,), jnp.float32),
        "fc_w": nrm(next(keys), (H, 1)),
        "fc_b": jnp.zeros((1,), jnp.float32),
        "layers": [],
    }
    for _ in range(cfg["num_layers"]):
        layer = {
            "q_w": nrm(next(keys), (H, H)), "q_b": jnp.zeros((H,), jnp.float32),
            "k_w": nrm(next(keys), (H, H)), "k_b": jnp.zeros((H,), jnp.float32),
            "v_w": nrm(next(keys), (H, H)), "v_b": jnp.zeros((H,), jnp.float32),
            "o_w": nrm(next(keys), (H, H)), "o_b": jnp.zeros((H,), jnp.float32),
            "attn_ln_g": jnp.ones((H,), jnp.float32), "attn_ln_b": jnp.zeros((H,), jnp.float32),
            "ffn_w1": nrm(next(keys), (H, I)), "ffn_b1": jnp.zeros((I,), jnp.float32),
            "ffn_w2": nrm(next(keys), (I, H)), "ffn_b2": jnp.zeros((H,), jnp.float32),
            "ffn_ln_g": jnp.ones((H,), jnp.float32), "ffn_ln_b": jnp.zeros((H,), jnp.float32),
        }
        params["layers"].append(layer)
    return params


# ----------------------------- forward pass -----------------------------

def phage_transformer_forward(params, input_ids, attention_mask, cfg):
    """input_ids, attention_mask: [B, S] int32 -> logits [B, 1] f32."""
    B, S = input_ids.shape
    H = cfg["hidden_size"]
    nH = cfg["num_heads"]
    Dh = H // nH
    L = cfg["num_layers"]
    scale = 1.0 / math.sqrt(Dh)

    # ---- embeddings (gathers are glue; everything else in the fused kernel) ----
    pos_ids = jnp.arange(S, dtype=jnp.int32)
    emb = (params["word_emb"][input_ids]
           + params["pos_emb"][pos_ids][None, :, :]
           + params["type_emb"][0][None, None, :]).astype(jnp.float32)     # [B, S, H]

    # BERT-style extended additive mask, kept compact as [B, 1, S]
    add_mask = ((1.0 - attention_mask.astype(jnp.float32)) * -10000.0)[:, None, :]

    # ---- stack per-layer weights (QKV fused to [H, 3H]) ----
    layers = params["layers"]
    qkv_w = jnp.stack([jnp.concatenate([l["q_w"], l["k_w"], l["v_w"]], axis=1) for l in layers])
    qkv_b = jnp.stack([jnp.concatenate([l["q_b"], l["k_b"], l["v_b"]])[None, :] for l in layers])
    o_w = jnp.stack([l["o_w"] for l in layers])
    o_b = jnp.stack([l["o_b"][None, :] for l in layers])
    ln1_g = jnp.stack([l["attn_ln_g"][None, :] for l in layers])
    ln1_b = jnp.stack([l["attn_ln_b"][None, :] for l in layers])
    w1 = jnp.stack([l["ffn_w1"] for l in layers])
    b1 = jnp.stack([l["ffn_b1"][None, :] for l in layers])
    w2 = jnp.stack([l["ffn_w2"] for l in layers])
    b2 = jnp.stack([l["ffn_b2"][None, :] for l in layers])
    ln2_g = jnp.stack([l["ffn_ln_g"][None, :] for l in layers])
    ln2_b = jnp.stack([l["ffn_ln_b"][None, :] for l in layers])

    emb_ln_g = params["emb_ln_g"][None, :]
    emb_ln_b = params["emb_ln_b"][None, :]
    pooler_w = params["pooler_w"]
    pooler_b = params["pooler_b"][None, :]
    fc_w = params["fc_w"]                    # [H, 1]
    fc_b = params["fc_b"][None, :]           # [1, 1]

    def _full_spec(arr):
        n = arr.ndim
        return pl.BlockSpec(arr.shape, lambda b: (0,) * n)

    weight_args = (emb_ln_g, emb_ln_b, qkv_w, qkv_b, o_w, o_b,
                   ln1_g, ln1_b, w1, b1, w2, b2, ln2_g, ln2_b,
                   pooler_w, pooler_b, fc_w, fc_b)

    in_specs = ([pl.BlockSpec((1, S, H), lambda b: (b, 0, 0)),      # per-batch embeddings
                 pl.BlockSpec((1, 1, S), lambda b: (b, 0, 0))]      # per-batch additive mask
                + [_full_spec(a) for a in weight_args])             # VMEM-resident weights

    kernel = functools.partial(_fused_bert_kernel, num_layers=L, num_heads=nH,
                               head_dim=Dh, scale=scale, eps=1e-12)

    logits = pl.pallas_call(
        kernel,
        grid=(B,),
        in_specs=in_specs,
        out_specs=pl.BlockSpec((1, 1, 1), lambda b: (b, 0, 0)),
        out_shape=jax.ShapeDtypeStruct((B, 1, 1), jnp.float32),
        compiler_params=pltpu.CompilerParams(dimension_semantics=("parallel",)),
    )(emb, add_mask, *weight_args)

    return logits.reshape(B, 1)


# ----------------------------- driver -----------------------------

if __name__ == "__main__":
    cfg = CONFIG
    key = jax.random.PRNGKey(0)
    k_param, k_ids, k_mask = jax.random.split(key, 3)

    params = init_params(k_param, cfg)

    B, S = 2, 8
    input_ids = jax.random.randint(k_ids, (B, S), 0, cfg["vocab_size"], dtype=jnp.int32)
    # deterministic mask: first row fully attended, second row has 2 padded positions
    attention_mask = jnp.array([[1] * S, [1] * (S - 2) + [0] * 2], dtype=jnp.int32)

    logits = phage_transformer_forward(params, input_ids, attention_mask, cfg)
    logits = jax.block_until_ready(logits)
    assert logits.shape == (B, 1) and logits.dtype == jnp.float32
    assert bool(jnp.all(jnp.isfinite(logits)))
    print("KERNEL_OK")
</pallas_src>

<mosaic_0001>
module attributes {stable_mosaic.version = 11 : i64} {
  func.func @_fused_bert_kernel(%arg0: i32, %arg1: memref<1x8x32xf32, #tpu.memory_space<vmem>>, %arg2: memref<1x1x8xf32, #tpu.memory_space<vmem>>, %arg3: memref<1x32xf32, #tpu.memory_space<vmem>>, %arg4: memref<1x32xf32, #tpu.memory_space<vmem>>, %arg5: memref<2x32x96xf32, #tpu.memory_space<vmem>>, %arg6: memref<2x1x96xf32, #tpu.memory_space<vmem>>, %arg7: memref<2x32x32xf32, #tpu.memory_space<vmem>>, %arg8: memref<2x1x32xf32, #tpu.memory_space<vmem>>, %arg9: memref<2x1x32xf32, #tpu.memory_space<vmem>>, %arg10: memref<2x1x32xf32, #tpu.memory_space<vmem>>, %arg11: memref<2x32x64xf32, #tpu.memory_space<vmem>>, %arg12: memref<2x1x64xf32, #tpu.memory_space<vmem>>, %arg13: memref<2x64x32xf32, #tpu.memory_space<vmem>>, %arg14: memref<2x1x32xf32, #tpu.memory_space<vmem>>, %arg15: memref<2x1x32xf32, #tpu.memory_space<vmem>>, %arg16: memref<2x1x32xf32, #tpu.memory_space<vmem>>, %arg17: memref<32x32xf32, #tpu.memory_space<vmem>>, %arg18: memref<1x32xf32, #tpu.memory_space<vmem>>, %arg19: memref<32x1xf32, #tpu.memory_space<vmem>>, %arg20: memref<1x1xf32, #tpu.memory_space<vmem>>, %arg21: memref<1x1x1xf32, #tpu.memory_space<vmem>>) attributes {dimension_semantics = [#tpu.dimension_semantics<parallel>], iteration_bounds = array<i64: 2>, scalar_prefetch = 0 : i64, scratch_operands = 0 : i64, tpu.core_type = #tpu.core_type<tc>, window_params = [{transform_indices = @transform_0, window_bounds = array<i64: 1, 8, 32>}, {transform_indices = @transform_1, window_bounds = array<i64: 1, 1, 8>}, {pipeline_mode = #tpu.pipeline_mode<synchronous>, transform_indices = @transform_2, window_bounds = array<i64: 1, 32>}, {pipeline_mode = #tpu.pipeline_mode<synchronous>, transform_indices = @transform_3, window_bounds = array<i64: 1, 32>}, {pipeline_mode = #tpu.pipeline_mode<synchronous>, transform_indices = @transform_4, window_bounds = array<i64: 2, 32, 96>}, {pipeline_mode = #tpu.pipeline_mode<synchronous>, transform_indices = @transform_5, window_bounds = array<i64: 2, 1, 96>}, {pipeline_mode = #tpu.pipeline_mode<synchronous>, transform_indices = @transform_6, window_bounds = array<i64: 2, 32, 32>}, {pipeline_mode = #tpu.pipeline_mode<synchronous>, transform_indices = @transform_7, window_bounds = array<i64: 2, 1, 32>}, {pipeline_mode = #tpu.pipeline_mode<synchronous>, transform_indices = @transform_8, window_bounds = array<i64: 2, 1, 32>}, {pipeline_mode = #tpu.pipeline_mode<synchronous>, transform_indices = @transform_9, window_bounds = array<i64: 2, 1, 32>}, {pipeline_mode = #tpu.pipeline_mode<synchronous>, transform_indices = @transform_10, window_bounds = array<i64: 2, 32, 64>}, {pipeline_mode = #tpu.pipeline_mode<synchronous>, transform_indices = @transform_11, window_bounds = array<i64: 2, 1, 64>}, {pipeline_mode = #tpu.pipeline_mode<synchronous>, transform_indices = @transform_12, window_bounds = array<i64: 2, 64, 32>}, {pipeline_mode = #tpu.pipeline_mode<synchronous>, transform_indices = @transform_13, window_bounds = array<i64: 2, 1, 32>}, {pipeline_mode = #tpu.pipeline_mode<synchronous>, transform_indices = @transform_14, window_bounds = array<i64: 2, 1, 32>}, {pipeline_mode = #tpu.pipeline_mode<synchronous>, transform_indices = @transform_15, window_bounds = array<i64: 2, 1, 32>}, {pipeline_mode = #tpu.pipeline_mode<synchronous>, transform_indices = @transform_16, window_bounds = array<i64: 32, 32>}, {pipeline_mode = #tpu.pipeline_mode<synchronous>, transform_indices = @transform_17, window_bounds = array<i64: 1, 32>}, {pipeline_mode = #tpu.pipeline_mode<synchronous>, transform_indices = @transform_18, window_bounds = array<i64: 32, 1>}, {pipeline_mode = #tpu.pipeline_mode<synchronous>, transform_indices = @transform_19, window_bounds = array<i64: 1, 1>}, {transform_indices = @transform_20, window_bounds = array<i64: 1, 1, 1>}]} {
    %c0 = arith.constant 0 : index
    %c0_0 = arith.constant 0 : index
    %c0_1 = arith.constant 0 : index
    %0 = vector.load %arg1[%c0, %c0_0, %c0_1] : memref<1x8x32xf32, #tpu.memory_space<vmem>>, vector<1x8x32xf32>
    %1 = vector.shape_cast %0 : vector<1x8x32xf32> to vector<8x32xf32>
    %c0_2 = arith.constant 0 : index
    %c0_3 = arith.constant 0 : index
    %c0_4 = arith.constant 0 : index
    %2 = vector.load %arg2[%c0_2, %c0_3, %c0_4] : memref<1x1x8xf32, #tpu.memory_space<vmem>>, vector<1x1x8xf32>
    %3 = vector.shape_cast %2 : vector<1x1x8xf32> to vector<1x8xf32>
    %c0_5 = arith.constant 0 : index
    %c0_6 = arith.constant 0 : index
    %4 = vector.load %arg3[%c0_5, %c0_6] : memref<1x32xf32, #tpu.memory_space<vmem>>, vector<1x32xf32>
    %c0_7 = arith.constant 0 : index
    %c0_8 = arith.constant 0 : index
    %5 = vector.load %arg4[%c0_7, %c0_8] : memref<1x32xf32, #tpu.memory_space<vmem>>, vector<1x32xf32>
    %cst = arith.constant dense<0.000000e+00> : vector<8xf32>
    %6 = vector.multi_reduction <add>, %1, %cst [1] : vector<8x32xf32> to vector<8xf32>
    %7 = vector.shape_cast %6 : vector<8xf32> to vector<8x1xf32>
    %cst_9 = arith.constant 3.200000e+01 : f32
    %8 = vector.broadcast %cst_9 : f32 to vector<8x1xf32>
    %9 = arith.divf %7, %8 : vector<8x1xf32>
    %10 = vector.broadcast %9 : vector<8x1xf32> to vector<8x32xf32>
    %11 = arith.subf %1, %10 : vector<8x32xf32>
    %12 = arith.mulf %11, %11 : vector<8x32xf32>
    %cst_10 = arith.constant dense<0.000000e+00> : vector<8xf32>
    %13 = vector.multi_reduction <add>, %12, %cst_10 [1] : vector<8x32xf32> to vector<8xf32>
    %14 = vector.shape_cast %13 : vector<8xf32> to vector<8x1xf32>
    %cst_11 = arith.constant 3.200000e+01 : f32
    %15 = vector.broadcast %cst_11 : f32 to vector<8x1xf32>
    %16 = arith.divf %14, %15 : vector<8x1xf32>
    %cst_12 = arith.constant 9.99999996E-13 : f32
    %17 = vector.broadcast %cst_12 : f32 to vector<8x1xf32>
    %18 = arith.addf %16, %17 : vector<8x1xf32>
    %19 = math.rsqrt %18 : vector<8x1xf32>
    %20 = vector.broadcast %19 : vector<8x1xf32> to vector<8x32xf32>
    %21 = arith.mulf %11, %20 : vector<8x32xf32>
    %22 = vector.broadcast %4 : vector<1x32xf32> to vector<8x32xf32>
    %23 = arith.mulf %21, %22 : vector<8x32xf32>
    %24 = vector.broadcast %5 : vector<1x32xf32> to vector<8x32xf32>
    %25 = arith.addf %23, %24 : vector<8x32xf32>
    %c0_13 = arith.constant 0 : index
    %c0_14 = arith.constant 0 : index
    %c0_15 = arith.constant 0 : index
    %26 = vector.load %arg5[%c0_13, %c0_14, %c0_15] : memref<2x32x96xf32, #tpu.memory_space<vmem>>, vector<1x32x96xf32>
    %27 = vector.shape_cast %26 : vector<1x32x96xf32> to vector<32x96xf32>
    %cst_16 = arith.constant dense<0.000000e+00> : vector<8x96xf32>
    %28 = tpu.matmul %25, %27, %cst_16 {dimension_numbers = #tpu.dot_dimension_numbers<[1], [0], [0], [1], [0, 0, 1, 1], [], []>} : vector<8x32xf32>, vector<32x96xf32>, vector<8x96xf32> -> vector<8x96xf32>
    %c0_17 = arith.constant 0 : index
    %c0_18 = arith.constant 0 : index
    %c0_19 = arith.constant 0 : index
    %29 = vector.load %arg6[%c0_17, %c0_18, %c0_19] : memref<2x1x96xf32, #tpu.memory_space<vmem>>, vector<1x1x96xf32>
    %30 = vector.shape_cast %29 : vector<1x1x96xf32> to vector<1x96xf32>
    %31 = vector.broadcast %30 : vector<1x96xf32> to vector<8x96xf32>
    %32 = arith.addf %28, %31 : vector<8x96xf32>
    %33 = vector.extract_strided_slice %32 {offsets = [0, 0], sizes = [8, 16], strides = [1, 1]} : vector<8x96xf32> to vector<8x16xf32>
    %34 = vector.extract_strided_slice %32 {offsets = [0, 32], sizes = [8, 16], strides = [1, 1]} : vector<8x96xf32> to vector<8x16xf32>
    %35 = vector.extract_strided_slice %32 {offsets = [0, 64], sizes = [8, 16], strides = [1, 1]} : vector<8x96xf32> to vector<8x16xf32>
    %cst_20 = arith.constant dense<0.000000e+00> : vector<8x8xf32>
    %36 = tpu.matmul %33, %34, %cst_20 {dimension_numbers = #tpu.dot_dimension_numbers<[1], [1], [0], [0], [0, 0, 1, 0], [], []>} : vector<8x16xf32>, vector<8x16xf32>, vector<8x8xf32> -> vector<8x8xf32>
    %cst_21 = arith.constant 2.500000e-01 : f32
    %37 = vector.broadcast %cst_21 : f32 to vector<8x8xf32>
    %38 = arith.mulf %36, %37 : vector<8x8xf32>
    %39 = vector.broadcast %3 : vector<1x8xf32> to vector<8x8xf32>
    %40 = arith.addf %38, %39 : vector<8x8xf32>
    %cst_22 = arith.constant dense<0xFF800000> : vector<8xf32>
    %41 = vector.multi_reduction <maximumf>, %40, %cst_22 [1] : vector<8x8xf32> to vector<8xf32>
    %42 = vector.shape_cast %41 : vector<8xf32> to vector<8x1xf32>
    %43 = vector.broadcast %42 : vector<8x1xf32> to vector<8x8xf32>
    %44 = arith.subf %40, %43 : vector<8x8xf32>
    %45 = math.exp %44 : vector<8x8xf32>
    %cst_23 = arith.constant dense<0.000000e+00> : vector<8xf32>
    %46 = vector.multi_reduction <add>, %45, %cst_23 [1] : vector<8x8xf32> to vector<8xf32>
    %47 = vector.shape_cast %46 : vector<8xf32> to vector<8x1xf32>
    %48 = tpu.reciprocal %47 {approx = true} : vector<8x1xf32> -> vector<8x1xf32>
    %49 = vector.broadcast %48 : vector<8x1xf32> to vector<8x8xf32>
    %50 = arith.mulf %45, %49 : vector<8x8xf32>
    %cst_24 = arith.constant dense<0.000000e+00> : vector<8x16xf32>
    %51 = tpu.matmul %50, %35, %cst_24 {dimension_numbers = #tpu.dot_dimension_numbers<[1], [0], [0], [1], [0, 0, 1, 1], [], []>} : vector<8x8xf32>, vector<8x16xf32>, vector<8x16xf32> -> vector<8x16xf32>
    %52 = vector.extract_strided_slice %32 {offsets = [0, 16], sizes = [8, 16], strides = [1, 1]} : vector<8x96xf32> to vector<8x16xf32>
    %53 = vector.extract_strided_slice %32 {offsets = [0, 48], sizes = [8, 16], strides = [1, 1]} : vector<8x96xf32> to vector<8x16xf32>
    %54 = vector.extract_strided_slice %32 {offsets = [0, 80], sizes = [8, 16], strides = [1, 1]} : vector<8x96xf32> to vector<8x16xf32>
    %cst_25 = arith.constant dense<0.000000e+00> : vector<8x8xf32>
    %55 = tpu.matmul %52, %53, %cst_25 {dimension_numbers = #tpu.dot_dimension_numbers<[1], [1], [0], [0], [0, 0, 1, 0], [], []>} : vector<8x16xf32>, vector<8x16xf32>, vector<8x8xf32> -> vector<8x8xf32>
    %cst_26 = arith.constant 2.500000e-01 : f32
    %56 = vector.broadcast %cst_26 : f32 to vector<8x8xf32>
    %57 = arith.mulf %55, %56 : vector<8x8xf32>
    %58 = vector.broadcast %3 : vector<1x8xf32> to vector<8x8xf32>
    %59 = arith.addf %57, %58 : vector<8x8xf32>
    %cst_27 = arith.constant dense<0xFF800000> : vector<8xf32>
    %60 = vector.multi_reduction <maximumf>, %59, %cst_27 [1] : vector<8x8xf32> to vector<8xf32>
    %61 = vector.shape_cast %60 : vector<8xf32> to vector<8x1xf32>
    %62 = vector.broadcast %61 : vector<8x1xf32> to vector<8x8xf32>
    %63 = arith.subf %59, %62 : vector<8x8xf32>
    %64 = math.exp %63 : vector<8x8xf32>
    %cst_28 = arith.constant dense<0.000000e+00> : vector<8xf32>
    %65 = vector.multi_reduction <add>, %64, %cst_28 [1] : vector<8x8xf32> to vector<8xf32>
    %66 = vector.shape_cast %65 : vector<8xf32> to vector<8x1xf32>
    %67 = tpu.reciprocal %66 {approx = true} : vector<8x1xf32> -> vector<8x1xf32>
    %68 = vector.broadcast %67 : vector<8x1xf32> to vector<8x8xf32>
    %69 = arith.mulf %64, %68 : vector<8x8xf32>
    %cst_29 = arith.constant dense<0.000000e+00> : vector<8x16xf32>
    %70 = tpu.matmul %69, %54, %cst_29 {dimension_numbers = #tpu.dot_dimension_numbers<[1], [0], [0], [1], [0, 0, 1, 1], [], []>} : vector<8x8xf32>, vector<8x16xf32>, vector<8x16xf32> -> vector<8x16xf32>
    %71 = tpu.concatenate %51, %70 in 1 : vector<8x16xf32>, vector<8x16xf32> -> vector<8x32xf32>
    %c0_30 = arith.constant 0 : index
    %c0_31 = arith.constant 0 : index
    %c0_32 = arith.constant 0 : index
    %72 = vector.load %arg7[%c0_30, %c0_31, %c0_32] : memref<2x32x32xf32, #tpu.memory_space<vmem>>, vector<1x32x32xf32>
    %73 = vector.shape_cast %72 : vector<1x32x32xf32> to vector<32x32xf32>
    %cst_33 = arith.constant dense<0.000000e+00> : vector<8x32xf32>
    %74 = tpu.matmul %71, %73, %cst_33 {dimension_numbers = #tpu.dot_dimension_numbers<[1], [0], [0], [1], [0, 0, 1, 1], [], []>} : vector<8x32xf32>, vector<32x32xf32>, vector<8x32xf32> -> vector<8x32xf32>
    %c0_34 = arith.constant 0 : index
    %c0_35 = arith.constant 0 : index
    %c0_36 = arith.constant 0 : index
    %75 = vector.load %arg8[%c0_34, %c0_35, %c0_36] : memref<2x1x32xf32, #tpu.memory_space<vmem>>, vector<1x1x32xf32>
    %76 = vector.shape_cast %75 : vector<1x1x32xf32> to vector<1x32xf32>
    %77 = vector.broadcast %76 : vector<1x32xf32> to vector<8x32xf32>
    %78 = arith.addf %74, %77 : vector<8x32xf32>
    %79 = arith.addf %78, %25 : vector<8x32xf32>
    %c0_37 = arith.constant 0 : index
    %c0_38 = arith.constant 0 : index
    %c0_39 = arith.constant 0 : index
    %80 = vector.load %arg9[%c0_37, %c0_38, %c0_39] : memref<2x1x32xf32, #tpu.memory_space<vmem>>, vector<1x1x32xf32>
    %81 = vector.shape_cast %80 : vector<1x1x32xf32> to vector<1x32xf32>
    %c0_40 = arith.constant 0 : index
    %c0_41 = arith.constant 0 : index
    %c0_42 = arith.constant 0 : index
    %82 = vector.load %arg10[%c0_40, %c0_41, %c0_42] : memref<2x1x32xf32, #tpu.memory_space<vmem>>, vector<1x1x32xf32>
    %83 = vector.shape_cast %82 : vector<1x1x32xf32> to vector<1x32xf32>
    %cst_43 = arith.constant dense<0.000000e+00> : vector<8xf32>
    %84 = vector.multi_reduction <add>, %79, %cst_43 [1] : vector<8x32xf32> to vector<8xf32>
    %85 = vector.shape_cast %84 : vector<8xf32> to vector<8x1xf32>
    %cst_44 = arith.constant 3.200000e+01 : f32
    %86 = vector.broadcast %cst_44 : f32 to vector<8x1xf32>
    %87 = arith.divf %85, %86 : vector<8x1xf32>
    %88 = vector.broadcast %87 : vector<8x1xf32> to vector<8x32xf32>
    %89 = arith.subf %79, %88 : vector<8x32xf32>
    %90 = arith.mulf %89, %89 : vector<8x32xf32>
    %cst_45 = arith.constant dense<0.000000e+00> : vector<8xf32>
    %91 = vector.multi_reduction <add>, %90, %cst_45 [1] : vector<8x32xf32> to vector<8xf32>
    %92 = vector.shape_cast %91 : vector<8xf32> to vector<8x1xf32>
    %cst_46 = arith.constant 3.200000e+01 : f32
    %93 = vector.broadcast %cst_46 : f32 to vector<8x1xf32>
    %94 = arith.divf %92, %93 : vector<8x1xf32>
    %cst_47 = arith.constant 9.99999996E-13 : f32
    %95 = vector.broadcast %cst_47 : f32 to vector<8x1xf32>
    %96 = arith.addf %94, %95 : vector<8x1xf32>
    %97 = math.rsqrt %96 : vector<8x1xf32>
    %98 = vector.broadcast %97 : vector<8x1xf32> to vector<8x32xf32>
    %99 = arith.mulf %89, %98 : vector<8x32xf32>
    %100 = vector.broadcast %81 : vector<1x32xf32> to vector<8x32xf32>
    %101 = arith.mulf %99, %100 : vector<8x32xf32>
    %102 = vector.broadcast %83 : vector<1x32xf32> to vector<8x32xf32>
    %103 = arith.addf %101, %102 : vector<8x32xf32>
    %c0_48 = arith.constant 0 : index
    %c0_49 = arith.constant 0 : index
    %c0_50 = arith.constant 0 : index
    %104 = vector.load %arg11[%c0_48, %c0_49, %c0_50] : memref<2x32x64xf32, #tpu.memory_space<vmem>>, vector<1x32x64xf32>
    %105 = vector.shape_cast %104 : vector<1x32x64xf32> to vector<32x64xf32>
    %cst_51 = arith.constant dense<0.000000e+00> : vector<8x64xf32>
    %106 = tpu.matmul %103, %105, %cst_51 {dimension_numbers = #tpu.dot_dimension_numbers<[1], [0], [0], [1], [0, 0, 1, 1], [], []>} : vector<8x32xf32>, vector<32x64xf32>, vector<8x64xf32> -> vector<8x64xf32>
    %c0_52 = arith.constant 0 : index
    %c0_53 = arith.constant 0 : index
    %c0_54 = arith.constant 0 : index
    %107 = vector.load %arg12[%c0_52, %c0_53, %c0_54] : memref<2x1x64xf32, #tpu.memory_space<vmem>>, vector<1x1x64xf32>
    %108 = vector.shape_cast %107 : vector<1x1x64xf32> to vector<1x64xf32>
    %109 = vector.broadcast %108 : vector<1x64xf32> to vector<8x64xf32>
    %110 = arith.addf %106, %109 : vector<8x64xf32>
    %cst_55 = arith.constant 5.000000e-01 : f32
    %111 = vector.broadcast %cst_55 : f32 to vector<8x64xf32>
    %112 = arith.mulf %111, %110 : vector<8x64xf32>
    %cst_56 = arith.constant 0.707106769 : f32
    %113 = vector.broadcast %cst_56 : f32 to vector<8x64xf32>
    %114 = arith.mulf %110, %113 : vector<8x64xf32>
    %115 = math.erf %114 : vector<8x64xf32>
    %cst_57 = arith.constant 1.000000e+00 : f32
    %116 = vector.broadcast %cst_57 : f32 to vector<8x64xf32>
    %117 = arith.addf %116, %115 : vector<8x64xf32>
    %118 = arith.mulf %112, %117 : vector<8x64xf32>
    %c0_58 = arith.constant 0 : index
    %c0_59 = arith.constant 0 : index
    %c0_60 = arith.constant 0 : index
    %119 = vector.load %arg13[%c0_58, %c0_59, %c0_60] : memref<2x64x32xf32, #tpu.memory_space<vmem>>, vector<1x64x32xf32>
    %120 = vector.shape_cast %119 : vector<1x64x32xf32> to vector<64x32xf32>
    %cst_61 = arith.constant dense<0.000000e+00> : vector<8x32xf32>
    %121 = tpu.matmul %118, %120, %cst_61 {dimension_numbers = #tpu.dot_dimension_numbers<[1], [0], [0], [1], [0, 0, 1, 1], [], []>} : vector<8x64xf32>, vector<64x32xf32>, vector<8x32xf32> -> vector<8x32xf32>
    %c0_62 = arith.constant 0 : index
    %c0_63 = arith.constant 0 : index
    %c0_64 = arith.constant 0 : index
    %122 = vector.load %arg14[%c0_62, %c0_63, %c0_64] : memref<2x1x32xf32, #tpu.memory_space<vmem>>, vector<1x1x32xf32>
    %123 = vector.shape_cast %122 : vector<1x1x32xf32> to vector<1x32xf32>
    %124 = vector.broadcast %123 : vector<1x32xf32> to vector<8x32xf32>
    %125 = arith.addf %121, %124 : vector<8x32xf32>
    %126 = arith.addf %125, %103 : vector<8x32xf32>
    %c0_65 = arith.constant 0 : index
    %c0_66 = arith.constant 0 : index
    %c0_67 = arith.constant 0 : index
    %127 = vector.load %arg15[%c0_65, %c0_66, %c0_67] : memref<2x1x32xf32, #tpu.memory_space<vmem>>, vector<1x1x32xf32>
    %128 = vector.shape_cast %127 : vector<1x1x32xf32> to vector<1x32xf32>
    %c0_68 = arith.constant 0 : index
    %c0_69 = arith.constant 0 : index
    %c0_70 = arith.constant 0 : index
    %129 = vector.load %arg16[%c0_68, %c0_69, %c0_70] : memref<2x1x32xf32, #tpu.memory_space<vmem>>, vector<1x1x32xf32>
    %130 = vector.shape_cast %129 : vector<1x1x32xf32> to vector<1x32xf32>
    %cst_71 = arith.constant dense<0.000000e+00> : vector<8xf32>
    %131 = vector.multi_reduction <add>, %126, %cst_71 [1] : vector<8x32xf32> to vector<8xf32>
    %132 = vector.shape_cast %131 : vector<8xf32> to vector<8x1xf32>
    %cst_72 = arith.constant 3.200000e+01 : f32
    %133 = vector.broadcast %cst_72 : f32 to vector<8x1xf32>
    %134 = arith.divf %132, %133 : vector<8x1xf32>
    %135 = vector.broadcast %134 : vector<8x1xf32> to vector<8x32xf32>
    %136 = arith.subf %126, %135 : vector<8x32xf32>
    %137 = arith.mulf %136, %136 : vector<8x32xf32>
    %cst_73 = arith.constant dense<0.000000e+00> : vector<8xf32>
    %138 = vector.multi_reduction <add>, %137, %cst_73 [1] : vector<8x32xf32> to vector<8xf32>
    %139 = vector.shape_cast %138 : vector<8xf32> to vector<8x1xf32>
    %cst_74 = arith.constant 3.200000e+01 : f32
    %140 = vector.broadcast %cst_74 : f32 to vector<8x1xf32>
    %141 = arith.divf %139, %140 : vector<8x1xf32>
    %cst_75 = arith.constant 9.99999996E-13 : f32
    %142 = vector.broadcast %cst_75 : f32 to vector<8x1xf32>
    %143 = arith.addf %141, %142 : vector<8x1xf32>
    %144 = math.rsqrt %143 : vector<8x1xf32>
    %145 = vector.broadcast %144 : vector<8x1xf32> to vector<8x32xf32>
    %146 = arith.mulf %136, %145 : vector<8x32xf32>
    %147 = vector.broadcast %128 : vector<1x32xf32> to vector<8x32xf32>
    %148 = arith.mulf %146, %147 : vector<8x32xf32>
    %149 = vector.broadcast %130 : vector<1x32xf32> to vector<8x32xf32>
    %150 = arith.addf %148, %149 : vector<8x32xf32>
    %c1 = arith.constant 1 : index
    %c0_76 = arith.constant 0 : index
    %c0_77 = arith.constant 0 : index
    %151 = vector.load %arg5[%c1, %c0_76, %c0_77] : memref<2x32x96xf32, #tpu.memory_space<vmem>>, vector<1x32x96xf32>
    %152 = vector.shape_cast %151 : vector<1x32x96xf32> to vector<32x96xf32>
    %cst_78 = arith.constant dense<0.000000e+00> : vector<8x96xf32>
    %153 = tpu.matmul %150, %152, %cst_78 {dimension_numbers = #tpu.dot_dimension_numbers<[1], [0], [0], [1], [0, 0, 1, 1], [], []>} : vector<8x32xf32>, vector<32x96xf32>, vector<8x96xf32> -> vector<8x96xf32>
    %c1_79 = arith.constant 1 : index
    %c0_80 = arith.constant 0 : index
    %c0_81 = arith.constant 0 : index
    %154 = vector.load %arg6[%c1_79, %c0_80, %c0_81] : memref<2x1x96xf32, #tpu.memory_space<vmem>>, vector<1x1x96xf32>
    %155 = vector.shape_cast %154 : vector<1x1x96xf32> to vector<1x96xf32>
    %156 = vector.broadcast %155 : vector<1x96xf32> to vector<8x96xf32>
    %157 = arith.addf %153, %156 : vector<8x96xf32>
    %158 = vector.extract_strided_slice %157 {offsets = [0, 0], sizes = [8, 16], strides = [1, 1]} : vector<8x96xf32> to vector<8x16xf32>
    %159 = vector.extract_strided_slice %157 {offsets = [0, 32], sizes = [8, 16], strides = [1, 1]} : vector<8x96xf32> to vector<8x16xf32>
    %160 = vector.extract_strided_slice %157 {offsets = [0, 64], sizes = [8, 16], strides = [1, 1]} : vector<8x96xf32> to vector<8x16xf32>
    %cst_82 = arith.constant dense<0.000000e+00> : vector<8x8xf32>
    %161 = tpu.matmul %158, %159, %cst_82 {dimension_numbers = #tpu.dot_dimension_numbers<[1], [1], [0], [0], [0, 0, 1, 0], [], []>} : vector<8x16xf32>, vector<8x16xf32>, vector<8x8xf32> -> vector<8x8xf32>
    %cst_83 = arith.constant 2.500000e-01 : f32
    %162 = vector.broadcast %cst_83 : f32 to vector<8x8xf32>
    %163 = arith.mulf %161, %162 : vector<8x8xf32>
    %164 = vector.broadcast %3 : vector<1x8xf32> to vector<8x8xf32>
    %165 = arith.addf %163, %164 : vector<8x8xf32>
    %cst_84 = arith.constant dense<0xFF800000> : vector<8xf32>
    %166 = vector.multi_reduction <maximumf>, %165, %cst_84 [1] : vector<8x8xf32> to vector<8xf32>
    %167 = vector.shape_cast %166 : vector<8xf32> to vector<8x1xf32>
    %168 = vector.broadcast %167 : vector<8x1xf32> to vector<8x8xf32>
    %169 = arith.subf %165, %168 : vector<8x8xf32>
    %170 = math.exp %169 : vector<8x8xf32>
    %cst_85 = arith.constant dense<0.000000e+00> : vector<8xf32>
    %171 = vector.multi_reduction <add>, %170, %cst_85 [1] : vector<8x8xf32> to vector<8xf32>
    %172 = vector.shape_cast %171 : vector<8xf32> to vector<8x1xf32>
    %173 = tpu.reciprocal %172 {approx = true} : vector<8x1xf32> -> vector<8x1xf32>
    %174 = vector.broadcast %173 : vector<8x1xf32> to vector<8x8xf32>
    %175 = arith.mulf %170, %174 : vector<8x8xf32>
    %cst_86 = arith.constant dense<0.000000e+00> : vector<8x16xf32>
    %176 = tpu.matmul %175, %160, %cst_86 {dimension_numbers = #tpu.dot_dimension_numbers<[1], [0], [0], [1], [0, 0, 1, 1], [], []>} : vector<8x8xf32>, vector<8x16xf32>, vector<8x16xf32> -> vector<8x16xf32>
    %177 = vector.extract_strided_slice %157 {offsets = [0, 16], sizes = [8, 16], strides = [1, 1]} : vector<8x96xf32> to vector<8x16xf32>
    %178 = vector.extract_strided_slice %157 {offsets = [0, 48], sizes = [8, 16], strides = [1, 1]} : vector<8x96xf32> to vector<8x16xf32>
    %179 = vector.extract_strided_slice %157 {offsets = [0, 80], sizes = [8, 16], strides = [1, 1]} : vector<8x96xf32> to vector<8x16xf32>
    %cst_87 = arith.constant dense<0.000000e+00> : vector<8x8xf32>
    %180 = tpu.matmul %177, %178, %cst_87 {dimension_numbers = #tpu.dot_dimension_numbers<[1], [1], [0], [0], [0, 0, 1, 0], [], []>} : vector<8x16xf32>, vector<8x16xf32>, vector<8x8xf32> -> vector<8x8xf32>
    %cst_88 = arith.constant 2.500000e-01 : f32
    %181 = vector.broadcast %cst_88 : f32 to vector<8x8xf32>
    %182 = arith.mulf %180, %181 : vector<8x8xf32>
    %183 = vector.broadcast %3 : vector<1x8xf32> to vector<8x8xf32>
    %184 = arith.addf %182, %183 : vector<8x8xf32>
    %cst_89 = arith.constant dense<0xFF800000> : vector<8xf32>
    %185 = vector.multi_reduction <maximumf>, %184, %cst_89 [1] : vector<8x8xf32> to vector<8xf32>
    %186 = vector.shape_cast %185 : vector<8xf32> to vector<8x1xf32>
    %187 = vector.broadcast %186 : vector<8x1xf32> to vector<8x8xf32>
    %188 = arith.subf %184, %187 : vector<8x8xf32>
    %189 = math.exp %188 : vector<8x8xf32>
    %cst_90 = arith.constant dense<0.000000e+00> : vector<8xf32>
    %190 = vector.multi_reduction <add>, %189, %cst_90 [1] : vector<8x8xf32> to vector<8xf32>
    %191 = vector.shape_cast %190 : vector<8xf32> to vector<8x1xf32>
    %192 = tpu.reciprocal %191 {approx = true} : vector<8x1xf32> -> vector<8x1xf32>
    %193 = vector.broadcast %192 : vector<8x1xf32> to vector<8x8xf32>
    %194 = arith.mulf %189, %193 : vector<8x8xf32>
    %cst_91 = arith.constant dense<0.000000e+00> : vector<8x16xf32>
    %195 = tpu.matmul %194, %179, %cst_91 {dimension_numbers = #tpu.dot_dimension_numbers<[1], [0], [0], [1], [0, 0, 1, 1], [], []>} : vector<8x8xf32>, vector<8x16xf32>, vector<8x16xf32> -> vector<8x16xf32>
    %196 = tpu.concatenate %176, %195 in 1 : vector<8x16xf32>, vector<8x16xf32> -> vector<8x32xf32>
    %c1_92 = arith.constant 1 : index
    %c0_93 = arith.constant 0 : index
    %c0_94 = arith.constant 0 : index
    %197 = vector.load %arg7[%c1_92, %c0_93, %c0_94] : memref<2x32x32xf32, #tpu.memory_space<vmem>>, vector<1x32x32xf32>
    %198 = vector.shape_cast %197 : vector<1x32x32xf32> to vector<32x32xf32>
    %cst_95 = arith.constant dense<0.000000e+00> : vector<8x32xf32>
    %199 = tpu.matmul %196, %198, %cst_95 {dimension_numbers = #tpu.dot_dimension_numbers<[1], [0], [0], [1], [0, 0, 1, 1], [], []>} : vector<8x32xf32>, vector<32x32xf32>, vector<8x32xf32> -> vector<8x32xf32>
    %c1_96 = arith.constant 1 : index
    %c0_97 = arith.constant 0 : index
    %c0_98 = arith.constant 0 : index
    %200 = vector.load %arg8[%c1_96, %c0_97, %c0_98] : memref<2x1x32xf32, #tpu.memory_space<vmem>>, vector<1x1x32xf32>
    %201 = vector.shape_cast %200 : vector<1x1x32xf32> to vector<1x32xf32>
    %202 = vector.broadcast %201 : vector<1x32xf32> to vector<8x32xf32>
    %203 = arith.addf %199, %202 : vector<8x32xf32>
    %204 = arith.addf %203, %150 : vector<8x32xf32>
    %c1_99 = arith.constant 1 : index
    %c0_100 = arith.constant 0 : index
    %c0_101 = arith.constant 0 : index
    %205 = vector.load %arg9[%c1_99, %c0_100, %c0_101] : memref<2x1x32xf32, #tpu.memory_space<vmem>>, vector<1x1x32xf32>
    %206 = vector.shape_cast %205 : vector<1x1x32xf32> to vector<1x32xf32>
    %c1_102 = arith.constant 1 : index
    %c0_103 = arith.constant 0 : index
    %c0_104 = arith.constant 0 : index
    %207 = vector.load %arg10[%c1_102, %c0_103, %c0_104] : memref<2x1x32xf32, #tpu.memory_space<vmem>>, vector<1x1x32xf32>
    %208 = vector.shape_cast %207 : vector<1x1x32xf32> to vector<1x32xf32>
    %cst_105 = arith.constant dense<0.000000e+00> : vector<8xf32>
    %209 = vector.multi_reduction <add>, %204, %cst_105 [1] : vector<8x32xf32> to vector<8xf32>
    %210 = vector.shape_cast %209 : vector<8xf32> to vector<8x1xf32>
    %cst_106 = arith.constant 3.200000e+01 : f32
    %211 = vector.broadcast %cst_106 : f32 to vector<8x1xf32>
    %212 = arith.divf %210, %211 : vector<8x1xf32>
    %213 = vector.broadcast %212 : vector<8x1xf32> to vector<8x32xf32>
    %214 = arith.subf %204, %213 : vector<8x32xf32>
    %215 = arith.mulf %214, %214 : vector<8x32xf32>
    %cst_107 = arith.constant dense<0.000000e+00> : vector<8xf32>
    %216 = vector.multi_reduction <add>, %215, %cst_107 [1] : vector<8x32xf32> to vector<8xf32>
    %217 = vector.shape_cast %216 : vector<8xf32> to vector<8x1xf32>
    %cst_108 = arith.constant 3.200000e+01 : f32
    %218 = vector.broadcast %cst_108 : f32 to vector<8x1xf32>
    %219 = arith.divf %217, %218 : vector<8x1xf32>
    %cst_109 = arith.constant 9.99999996E-13 : f32
    %220 = vector.broadcast %cst_109 : f32 to vector<8x1xf32>
    %221 = arith.addf %219, %220 : vector<8x1xf32>
    %222 = math.rsqrt %221 : vector<8x1xf32>
    %223 = vector.broadcast %222 : vector<8x1xf32> to vector<8x32xf32>
    %224 = arith.mulf %214, %223 : vector<8x32xf32>
    %225 = vector.broadcast %206 : vector<1x32xf32> to vector<8x32xf32>
    %226 = arith.mulf %224, %225 : vector<8x32xf32>
    %227 = vector.broadcast %208 : vector<1x32xf32> to vector<8x32xf32>
    %228 = arith.addf %226, %227 : vector<8x32xf32>
    %c1_110 = arith.constant 1 : index
    %c0_111 = arith.constant 0 : index
    %c0_112 = arith.constant 0 : index
    %229 = vector.load %arg11[%c1_110, %c0_111, %c0_112] : memref<2x32x64xf32, #tpu.memory_space<vmem>>, vector<1x32x64xf32>
    %230 = vector.shape_cast %229 : vector<1x32x64xf32> to vector<32x64xf32>
    %cst_113 = arith.constant dense<0.000000e+00> : vector<8x64xf32>
    %231 = tpu.matmul %228, %230, %cst_113 {dimension_numbers = #tpu.dot_dimension_numbers<[1], [0], [0], [1], [0, 0, 1, 1], [], []>} : vector<8x32xf32>, vector<32x64xf32>, vector<8x64xf32> -> vector<8x64xf32>
    %c1_114 = arith.constant 1 : index
    %c0_115 = arith.constant 0 : index
    %c0_116 = arith.constant 0 : index
    %232 = vector.load %arg12[%c1_114, %c0_115, %c0_116] : memref<2x1x64xf32, #tpu.memory_space<vmem>>, vector<1x1x64xf32>
    %233 = vector.shape_cast %232 : vector<1x1x64xf32> to vector<1x64xf32>
    %234 = vector.broadcast %233 : vector<1x64xf32> to vector<8x64xf32>
    %235 = arith.addf %231, %234 : vector<8x64xf32>
    %cst_117 = arith.constant 5.000000e-01 : f32
    %236 = vector.broadcast %cst_117 : f32 to vector<8x64xf32>
    %237 = arith.mulf %236, %235 : vector<8x64xf32>
    %cst_118 = arith.constant 0.707106769 : f32
    %238 = vector.broadcast %cst_118 : f32 to vector<8x64xf32>
    %239 = arith.mulf %235, %238 : vector<8x64xf32>
    %240 = math.erf %239 : vector<8x64xf32>
    %cst_119 = arith.constant 1.000000e+00 : f32
    %241 = vector.broadcast %cst_119 : f32 to vector<8x64xf32>
    %242 = arith.addf %241, %240 : vector<8x64xf32>
    %243 = arith.mulf %237, %242 : vector<8x64xf32>
    %c1_120 = arith.constant 1 : index
    %c0_121 = arith.constant 0 : index
    %c0_122 = arith.constant 0 : index
    %244 = vector.load %arg13[%c1_120, %c0_121, %c0_122] : memref<2x64x32xf32, #tpu.memory_space<vmem>>, vector<1x64x32xf32>
    %245 = vector.shape_cast %244 : vector<1x64x32xf32> to vector<64x32xf32>
    %cst_123 = arith.constant dense<0.000000e+00> : vector<8x32xf32>
    %246 = tpu.matmul %243, %245, %cst_123 {dimension_numbers = #tpu.dot_dimension_numbers<[1], [0], [0], [1], [0, 0, 1, 1], [], []>} : vector<8x64xf32>, vector<64x32xf32>, vector<8x32xf32> -> vector<8x32xf32>
    %c1_124 = arith.constant 1 : index
    %c0_125 = arith.constant 0 : index
    %c0_126 = arith.constant 0 : index
    %247 = vector.load %arg14[%c1_124, %c0_125, %c0_126] : memref<2x1x32xf32, #tpu.memory_space<vmem>>, vector<1x1x32xf32>
    %248 = vector.shape_cast %247 : vector<1x1x32xf32> to vector<1x32xf32>
    %249 = vector.broadcast %248 : vector<1x32xf32> to vector<8x32xf32>
    %250 = arith.addf %246, %249 : vector<8x32xf32>
    %251 = arith.addf %250, %228 : vector<8x32xf32>
    %c1_127 = arith.constant 1 : index
    %c0_128 = arith.constant 0 : index
    %c0_129 = arith.constant 0 : index
    %252 = vector.load %arg15[%c1_127, %c0_128, %c0_129] : memref<2x1x32xf32, #tpu.memory_space<vmem>>, vector<1x1x32xf32>
    %253 = vector.shape_cast %252 : vector<1x1x32xf32> to vector<1x32xf32>
    %c1_130 = arith.constant 1 : index
    %c0_131 = arith.constant 0 : index
    %c0_132 = arith.constant 0 : index
    %254 = vector.load %arg16[%c1_130, %c0_131, %c0_132] : memref<2x1x32xf32, #tpu.memory_space<vmem>>, vector<1x1x32xf32>
    %255 = vector.shape_cast %254 : vector<1x1x32xf32> to vector<1x32xf32>
    %cst_133 = arith.constant dense<0.000000e+00> : vector<8xf32>
    %256 = vector.multi_reduction <add>, %251, %cst_133 [1] : vector<8x32xf32> to vector<8xf32>
    %257 = vector.shape_cast %256 : vector<8xf32> to vector<8x1xf32>
    %cst_134 = arith.constant 3.200000e+01 : f32
    %258 = vector.broadcast %cst_134 : f32 to vector<8x1xf32>
    %259 = arith.divf %257, %258 : vector<8x1xf32>
    %260 = vector.broadcast %259 : vector<8x1xf32> to vector<8x32xf32>
    %261 = arith.subf %251, %260 : vector<8x32xf32>
    %262 = arith.mulf %261, %261 : vector<8x32xf32>
    %cst_135 = arith.constant dense<0.000000e+00> : vector<8xf32>
    %263 = vector.multi_reduction <add>, %262, %cst_135 [1] : vector<8x32xf32> to vector<8xf32>
    %264 = vector.shape_cast %263 : vector<8xf32> to vector<8x1xf32>
    %cst_136 = arith.constant 3.200000e+01 : f32
    %265 = vector.broadcast %cst_136 : f32 to vector<8x1xf32>
    %266 = arith.divf %264, %265 : vector<8x1xf32>
    %cst_137 = arith.constant 9.99999996E-13 : f32
    %267 = vector.broadcast %cst_137 : f32 to vector<8x1xf32>
    %268 = arith.addf %266, %267 : vector<8x1xf32>
    %269 = math.rsqrt %268 : vector<8x1xf32>
    %270 = vector.broadcast %269 : vector<8x1xf32> to vector<8x32xf32>
    %271 = arith.mulf %261, %270 : vector<8x32xf32>
    %272 = vector.broadcast %253 : vector<1x32xf32> to vector<8x32xf32>
    %273 = arith.mulf %271, %272 : vector<8x32xf32>
    %274 = vector.broadcast %255 : vector<1x32xf32> to vector<8x32xf32>
    %275 = arith.addf %273, %274 : vector<8x32xf32>
    %276 = vector.extract_strided_slice %275 {offsets = [0, 0], sizes = [1, 32], strides = [1, 1]} : vector<8x32xf32> to vector<1x32xf32>
    %c0_138 = arith.constant 0 : index
    %c0_139 = arith.constant 0 : index
    %277 = vector.load %arg17[%c0_138, %c0_139] : memref<32x32xf32, #tpu.memory_space<vmem>>, vector<32x32xf32>
    %cst_140 = arith.constant dense<0.000000e+00> : vector<1x32xf32>
    %278 = tpu.matmul %276, %277, %cst_140 {dimension_numbers = #tpu.dot_dimension_numbers<[1], [0], [0], [1], [0, 0, 1, 1], [], []>} : vector<1x32xf32>, vector<32x32xf32>, vector<1x32xf32> -> vector<1x32xf32>
    %c0_141 = arith.constant 0 : index
    %c0_142 = arith.constant 0 : index
    %279 = vector.load %arg18[%c0_141, %c0_142] : memref<1x32xf32, #tpu.memory_space<vmem>>, vector<1x32xf32>
    %280 = arith.addf %278, %279 : vector<1x32xf32>
    %281 = math.tanh %280 : vector<1x32xf32>
    %c0_143 = arith.constant 0 : index
    %c0_144 = arith.constant 0 : index
    %282 = vector.load %arg19[%c0_143, %c0_144] : memref<32x1xf32, #tpu.memory_space<vmem>>, vector<32x1xf32>
    %cst_145 = arith.constant dense<0.000000e+00> : vector<1x1xf32>
    %283 = tpu.matmul %281, %282, %cst_145 {dimension_numbers = #tpu.dot_dimension_numbers<[1], [0], [0], [1], [0, 0, 1, 1], [], []>} : vector<1x32xf32>, vector<32x1xf32>, vector<1x1xf32> -> vector<1x1xf32>
    %c0_146 = arith.constant 0 : index
    %c0_147 = arith.constant 0 : index
    %284 = vector.load %arg20[%c0_146, %c0_147] : memref<1x1xf32, #tpu.memory_space<vmem>>, vector<1x1xf32>
    %285 = arith.addf %283, %284 : vector<1x1xf32>
    %286 = vector.shape_cast %285 : vector<1x1xf32> to vector<1x1x1xf32>
    %c0_148 = arith.constant 0 : index
    %c0_149 = arith.constant 0 : index
    %c0_150 = arith.constant 0 : index
    %287 = vector.load %arg21[%c0_148, %c0_149, %c0_150] : memref<1x1x1xf32, #tpu.memory_space<vmem>>, vector<1x1x1xf32>
    tpu.vector_store %arg21[%c0_148, %c0_149, %c0_150], %286 {strides = array<i32>} : memref<1x1x1xf32, #tpu.memory_space<vmem>>, vector<1x1x1xf32>,
    return
  }
  func.func @transform_0(%arg0: i32) -> (i32, i32, i32) {
    %c0_i32 = arith.constant 0 : i32
    %c0_i32_0 = arith.constant 0 : i32
    %c0_i32_1 = arith.constant 0 : i32
    return %arg0, %c0_i32, %c0_i32_0 : i32, i32, i32
  }
  func.func @transform_1(%arg0: i32) -> (i32, i32, i32) {
    %c0_i32 = arith.constant 0 : i32
    %c0_i32_0 = arith.constant 0 : i32
    %c0_i32_1 = arith.constant 0 : i32
    return %arg0, %c0_i32, %c0_i32_0 : i32, i32, i32
  }
  func.func @transform_2(%arg0: i32) -> (i32, i32) {
    %c0_i32 = arith.constant 0 : i32
    %c0_i32_0 = arith.constant 0 : i32
    %c0_i32_1 = arith.constant 0 : i32
    return %c0_i32, %c0_i32_0 : i32, i32
  }
  func.func @transform_3(%arg0: i32) -> (i32, i32) {
    %c0_i32 = arith.constant 0 : i32
    %c0_i32_0 = arith.constant 0 : i32
    %c0_i32_1 = arith.constant 0 : i32
    return %c0_i32, %c0_i32_0 : i32, i32
  }
  func.func @transform_4(%arg0: i32) -> (i32, i32, i32) {
    %c0_i32 = arith.constant 0 : i32
    %c0_i32_0 = arith.constant 0 : i32
    %c0_i32_1 = arith.constant 0 : i32
    %c0_i32_2 = arith.constant 0 : i32
    return %c0_i32, %c0_i32_0, %c0_i32_1 : i32, i32, i32
  }
  func.func @transform_5(%arg0: i32) -> (i32, i32, i32) {
    %c0_i32 = arith.constant 0 : i32
    %c0_i32_0 = arith.constant 0 : i32
    %c0_i32_1 = arith.constant 0 : i32
    %c0_i32_2 = arith.constant 0 : i32
    return %c0_i32, %c0_i32_0, %c0_i32_1 : i32, i32, i32
  }
  func.func @transform_6(%arg0: i32) -> (i32, i32, i32) {
    %c0_i32 = arith.constant 0 : i32
    %c0_i32_0 = arith.constant 0 : i32
    %c0_i32_1 = arith.constant 0 : i32
    %c0_i32_2 = arith.constant 0 : i32
    return %c0_i32, %c0_i32_0, %c0_i32_1 : i32, i32, i32
  }
  func.func @transform_7(%arg0: i32) -> (i32, i32, i32) {
    %c0_i32 = arith.constant 0 : i32
    %c0_i32_0 = arith.constant 0 : i32
    %c0_i32_1 = arith.constant 0 : i32
    %c0_i32_2 = arith.constant 0 : i32
    return %c0_i32, %c0_i32_0, %c0_i32_1 : i32, i32, i32
  }
  func.func @transform_8(%arg0: i32) -> (i32, i32, i32) {
    %c0_i32 = arith.constant 0 : i32
    %c0_i32_0 = arith.constant 0 : i32
    %c0_i32_1 = arith.constant 0 : i32
    %c0_i32_2 = arith.constant 0 : i32
    return %c0_i32, %c0_i32_0, %c0_i32_1 : i32, i32, i32
  }
  func.func @transform_9(%arg0: i32) -> (i32, i32, i32) {
    %c0_i32 = arith.constant 0 : i32
    %c0_i32_0 = arith.constant 0 : i32
    %c0_i32_1 = arith.constant 0 : i32
    %c0_i32_2 = arith.constant 0 : i32
    return %c0_i32, %c0_i32_0, %c0_i32_1 : i32, i32, i32
  }
  func.func @transform_10(%arg0: i32) -> (i32, i32, i32) {
    %c0_i32 = arith.constant 0 : i32
    %c0_i32_0 = arith.constant 0 : i32
    %c0_i32_1 = arith.constant 0 : i32
    %c0_i32_2 = arith.constant 0 : i32
    return %c0_i32, %c0_i32_0, %c0_i32_1 : i32, i32, i32
  }
  func.func @transform_11(%arg0: i32) -> (i32, i32, i32) {
    %c0_i32 = arith.constant 0 : i32
    %c0_i32_0 = arith.constant 0 : i32
    %c0_i32_1 = arith.constant 0 : i32
    %c0_i32_2 = arith.constant 0 : i32
    return %c0_i32, %c0_i32_0, %c0_i32_1 : i32, i32, i32
  }
  func.func @transform_12(%arg0: i32) -> (i32, i32, i32) {
    %c0_i32 = arith.constant 0 : i32
    %c0_i32_0 = arith.constant 0 : i32
    %c0_i32_1 = arith.constant 0 : i32
    %c0_i32_2 = arith.constant 0 : i32
    return %c0_i32, %c0_i32_0, %c0_i32_1 : i32, i32, i32
  }
  func.func @transform_13(%arg0: i32) -> (i32, i32, i32) {
    %c0_i32 = arith.constant 0 : i32
    %c0_i32_0 = arith.constant 0 : i32
    %c0_i32_1 = arith.constant 0 : i32
    %c0_i32_2 = arith.constant 0 : i32
    return %c0_i32, %c0_i32_0, %c0_i32_1 : i32, i32, i32
  }
  func.func @transform_14(%arg0: i32) -> (i32, i32, i32) {
    %c0_i32 = arith.constant 0 : i32
    %c0_i32_0 = arith.constant 0 : i32
    %c0_i32_1 = arith.constant 0 : i32
    %c0_i32_2 = arith.constant 0 : i32
    return %c0_i32, %c0_i32_0, %c0_i32_1 : i32, i32, i32
  }
  func.func @transform_15(%arg0: i32) -> (i32, i32, i32) {
    %c0_i32 = arith.constant 0 : i32
    %c0_i32_0 = arith.constant 0 : i32
    %c0_i32_1 = arith.constant 0 : i32
    %c0_i32_2 = arith.constant 0 : i32
    return %c0_i32, %c0_i32_0, %c0_i32_1 : i32, i32, i32
  }
  func.func @transform_16(%arg0: i32) -> (i32, i32) {
    %c0_i32 = arith.constant 0 : i32
    %c0_i32_0 = arith.constant 0 : i32
    %c0_i32_1 = arith.constant 0 : i32
    return %c0_i32, %c0_i32_0 : i32, i32
  }
  func.func @transform_17(%arg0: i32) -> (i32, i32) {
    %c0_i32 = arith.constant 0 : i32
    %c0_i32_0 = arith.constant 0 : i32
    %c0_i32_1 = arith.constant 0 : i32
    return %c0_i32, %c0_i32_0 : i32, i32
  }
  func.func @transform_18(%arg0: i32) -> (i32, i32) {
    %c0_i32 = arith.constant 0 : i32
    %c0_i32_0 = arith.constant 0 : i32
    %c0_i32_1 = arith.constant 0 : i32
    return %c0_i32, %c0_i32_0 : i32, i32
  }
  func.func @transform_19(%arg0: i32) -> (i32, i32) {
    %c0_i32 = arith.constant 0 : i32
    %c0_i32_0 = arith.constant 0 : i32
    %c0_i32_1 = arith.constant 0 : i32
    return %c0_i32, %c0_i32_0 : i32, i32
  }
  func.func @transform_20(%arg0: i32) -> (i32, i32, i32) {
    %c0_i32 = arith.constant 0 : i32
    %c0_i32_0 = arith.constant 0 : i32
    %c0_i32_1 = arith.constant 0 : i32
    return %arg0, %c0_i32, %c0_i32_0 : i32, i32, i32
  }
}

</mosaic_0001>

<bundles_post_ra>
// kernel: tpu_custom_call.1
= control target key start
LH: loop header
LB: loop body
LE: loop exit
PB: predicated region body
PF: predicated region fallthrough
CT: control target
= control target key end

     0   :  { %s3621_s0 = inlined_call_operand.hbm [shape: f32[2,8,32], index: 0, kind: input, shape index: {}]   ;;  %s3622_s1 = inlined_call_operand.vmem [shape: f32[2,1,8], index: 1, kind: input, shape index: {}]   ;;  %s3623_s2 = inlined_call_operand.hbm [shape: f32[1,32], index: 2, kind: input, shape index: {}]   ;;  %s3624_s3 = inlined_call_operand.hbm [shape: f32[1,32], index: 3, kind: input, shape index: {}]   ;;  %s3625_s4 = inlined_call_operand.vmem [shape: f32[2,32,96], index: 4, kind: input, shape index: {}]   ;;  %s3626_s5 = inlined_call_operand.vmem [shape: f32[2,1,96], index: 5, kind: input, shape index: {}]   ;;  %s3627_s6 = inlined_call_operand.vmem [shape: f32[2,32,32], index: 6, kind: input, shape index: {}]   ;;  %s3628_s7 = inlined_call_operand.vmem [shape: f32[2,1,32], index: 7, kind: input, shape index: {}]   ;;  %s3629_s8 = inlined_call_operand.vmem [shape: f32[2,1,32], index: 8, kind: input, shape index: {}]   ;;  %s3630_s9 = inlined_call_operand.vmem [shape: f32[2,1,32], index: 9, kind: input, shape index: {}]   ;;  %s3631_s10 = inlined_call_operand.vmem [shape: f32[2,32,64], index: 10, kind: input, shape index: {}]   ;;  %s3632_s11 = inlined_call_operand.vmem [shape: f32[2,1,64], index: 11, kind: input, shape index: {}]   ;;  %s3633_s12 = inlined_call_operand.vmem [shape: f32[2,64,32], index: 12, kind: input, shape index: {}]   ;;  %s3634_s13 = inlined_call_operand.vmem [shape: f32[2,1,32], index: 13, kind: input, shape index: {}]   ;;  %s3635_s14 = inlined_call_operand.vmem [shape: f32[2,1,32], index: 14, kind: input, shape index: {}]   ;;  %s3636_s15 = inlined_call_operand.vmem [shape: f32[2,1,32], index: 15, kind: input, shape index: {}]   ;;  %s3637_s16 = inlined_call_operand.vmem [shape: f32[32,32], index: 16, kind: input, shape index: {}]   ;;  %s3638_s17 = inlined_call_operand.vmem [shape: f32[1,32], index: 17, kind: input, shape index: {}]   ;;  %s3639_s18 = inlined_call_operand.vmem [shape: f32[32,1], index: 18, kind: input, shape index: {}]   ;;  %s3640_s19 = inlined_call_operand.<no memory space> [shape: f32[1,1], index: 19, kind: input, shape index: {}]   ;;  %s3641_s20 = inlined_call_operand.vmem [shape: f32[2,1,1], index: 20, kind: output, shape index: {}]  }
   0x1   :  { %3651 = sst [smem:[#allocation13_spill]] %s3621_s0  ;;  %v25_v0 = vstv %s3640_s19 }
   0x2   :  { %3652 = sst [smem:[#allocation14_spill]] %s3622_s1  ;;  %26 = vst [vmem:[#allocation2] sm:$0x1] %v25_v0 }
   0x3   :  { %3653 = sst [smem:[#allocation15_spill]] %s3623_s2 }
   0x4   :  { %3654 = sst [smem:[#allocation16_spill]] %s3624_s3 }
   0x5   :  { %3655 = sst [smem:[#allocation17_spill]] %s3625_s4 }
   0x6   :  { %3656 = sst [smem:[#allocation18_spill]] %s3638_s17 }
   0x7   :  { %3657 = sst [smem:[#allocation19_spill]] %s3639_s18 }
   0x8   :  { %3658 = sst [smem:[#allocation20_spill]] %s3641_s20 }
   0x9   :  { %27 = vsyncpa [#allocation4], 0 }
   0xa   :  { %29 = vsyncpa [#allocation4 + $0x1], 0 }
   0xb   :  { %30 = vsyncpa [#allocation6], 0  ;;  %s3131_s23 = smov 0   ;;  %s3133_s24 = smov 0  }
   0xc   :  { %s3135_s2 = smov 0   ;;  %s3137_s25 = smov 0  }
   0xd LB: > { %3659 = sst [smem:[#allocation10_spill]] %s3006_s2  ;;  %s3150_s19 = sadd.s32 4294967295, %s3010_s25   ;;  %s3010_s25 = sphi %s3137_s25, %s3678_s25   ;;  %s3006_s2 = sphi %s3135_s2, %s3680_s2   ;;  %s3002_s24 = sphi %s3133_s24, %s3682_s24   ;;  %s2998_s23 = sphi %s3131_s23, %s3681_s23  }
   0xe   : > { %p56_p0 = scmp.ne.s32.totalorder %s3002_s24, %s2998_s23  ;;  %p3646_p1 = scmp.eq.s32.totalorder %s3150_s19, 0 }
   0xf   : > { %p2471_p2 = scmp.ge.s32.totalorder %s3010_s25, 1  ;;  %p497_p3 = scmp.lt.s32.totalorder %s3010_s25, 3 }
  0x10   : > { %p3158_p4 = por %p3646_p1, %p56_p0  ;;  %s3012_s27 = smov [#allocation5]  }
  0x11   : > { %p3162_p5 = pnand %p2471_p2, %p497_p3  ;;  %s510_s28 = sshll.u32 %s3012_s27, 4  ;;  %s511_s28 = int_to_ptr.vmem [resolvable:$true] %s510_s28 }
  0x12   : > { %s3660_s3 = scalar_select %p3158_p4, 1, 0 }
  0x13   : > { %s3661_s26 = scalar_select %p3162_p5, 1, 0 }
  0x14   : > { %p2802_p6 = pneg %p3162_p5  ;;  %s3013_s4 = smov [#allocation7]  }
  0x15   : > { %s521_s29 = sshll.u32 %s3013_s4, 4  ;;  %s3175_s0 = sadd.s32 1, %s3010_s25   ;;  %s522_s29 = int_to_ptr.vmem [resolvable:$true] %s521_s29 }
  0x16   : > { %p3170_p7 = pnand %p2802_p6, %p3646_p1  ;;  %3663 = sst [smem:[#allocation11_spill]] %s3175_s0 }
  0x17   : > { %s40_s21 = ssub.s32 %s3010_s25, %s3175_s0  ;;  %s2903_s1 = scalar_lea.vmem %s511_s28, 16 }
  0x18   : > { %p2894_p8 = pneg %p3170_p7  ;;  %p2904_p9 = scmp.ne.s32.totalorder %s511_s28, %s2903_s1 }
  0x19   : > { %s2910_s22 = scalar_lea.vmem %s511_s28, 32  ;;  %p2911_p12 = scmp.lt.s32.totalorder %s511_s28, %s511_s28 }
  0x1a   : > { %p2906_p10 = pnand %p2904_p9, %p2894_p8  ;;  %p2912_p13 = scmp.lt.s32.totalorder %s2910_s22, %s2903_s1 }
  0x1c   : > { %p2907_p11 = pneg %p2906_p10  ;;  %p2913_p0 = por %p2912_p13, %p2911_p12 }
  0x1e   : > { %p2914_p2 = pnand %p2913_p0, %p2907_p11 }
  0x20   : > { %2917 = shalt.err (!%p2914_p2)
}
  0x21   : > { %s3664_s4 = sld [smem:[#allocation15_spill]]  ;;  %s2929_s0 = scalar_lea.vmem %s522_s29, 16 }
  0x22   : > { %p2930_p3 = scmp.ne.s32.totalorder %s522_s29, %s2929_s0  ;;  %s2936_s20 = scalar_lea.vmem %s522_s29, 32 }
  0x23   : > { %p2937_p10 = scmp.lt.s32.totalorder %s522_s29, %s522_s29  ;;  %p2938_p1 = scmp.lt.s32.totalorder %s2936_s20, %s2929_s0 }
  0x24   : > { %p2932_p6 = pnand %p2930_p3, %p2894_p8 }
  0x25   : > { %p2939_p4 = por %p2938_p1, %p2937_p10 }
  0x26   : > { %p2933_p9 = pneg %p2932_p6 }
  0x27   : > { %2805 = dma.hbm_to_vmem [thread:$0]  (!%p3170_p7), %s3664_s4, 16, %s511_s28, [#allocation6]  }
  0x28   : > { %p2940_p12 = pnand %p2939_p4, %p2933_p9 }
  0x2a   : > { %2943 = shalt.err (!%p2940_p12)
}
  0x2b   : > { %s3665_s17 = sld [smem:[#allocation16_spill]]  ;;  %p41_p8 = scmp.eq.s32.totalorder %s40_s21, 0 }
  0x2c   : > { %s43_s28 = sadd.s32 1, %s3006_s2  ;;  %p50_p11 = scmp.ne.s32.totalorder %s3006_s2, %s3002_s24 }
  0x2d   : > { %p51_p1 = scmp.eq.s32.totalorder %s3010_s25, 0  ;;  %p2815_p13 = scmp.lt.s32.totalorder %s3010_s25, 2 }
  0x2e   : > { %s3202_s20 = scalar_select %p41_p8, %s3006_s2, %s43_s28  }
  0x2f   : > { %p52_p4 = por %p51_p1, %p50_p11  ;;  %s580_s30 = sand.u32 1, %s3006_s2  }
  0x30   : > { %3666 = sst [smem:[#allocation12_spill]] %s3202_s20  ;;  %s2476_s0 = sshll.u32 %s3010_s25, 7 }
  0x31   : > { %2808 = dma.hbm_to_vmem [thread:$0]  (!%p3170_p7), %s3665_s17, 16, %s522_s29, [#allocation6]  }
  0x32   : > { %s2475_s23 = sshll.u32 %s580_s30, 3  ;;  %s3667_s1 = sld [smem:[#allocation13_spill]] }
  0x33   : > { %s584_s17 = scalar_lea.vmem [#allocation3], %s2475_s23  ;;  %p3212_p7 = pnand %p2815_p13, %p52_p4 }
  0x34   : > { %s591_s29 = sshll.u32 %s584_s17, 4  ;;  %s581_s28 = scalar_lea.sflag [#allocation4], %s580_s30  ;;  %s592_s29 = int_to_ptr.vmem [resolvable:$true] %s591_s29 }
  0x35   : > { %p2946_p2 = pneg %p3212_p7 }
  0x38   : > { %s3210_s22 = scalar_lea.hbm %s3667_s1, %s2476_s0  ;;  %s2949_s27 = scalar_lea.hbm %s3667_s1, 256 }
  0x39   : > { %s2944_s20 = scalar_lea.hbm %s3210_s22, 128  ;;  %p2950_p9 = scmp.lt.s32.totalorder %s3210_s22, %s3667_s1 }
  0x3a   : > { %p2945_p0 = scmp.ne.s32.totalorder %s3210_s22, %s2944_s20  ;;  %p2951_p10 = scmp.lt.s32.totalorder %s2949_s27, %s2944_s20 }
  0x3c   : > { %p2947_p3 = pnand %p2946_p2, %p2945_p0  ;;  %p2952_p12 = por %p2951_p10, %p2950_p9 }
  0x3e   : > { %p2948_p6 = pneg %p2947_p3 }
  0x40   : > { %p2953_p8 = pnand %p2952_p12, %p2948_p6 }
  0x42   : > { %2956 = shalt.err (!%p2953_p8)
}
  0x43   : > { %s2957_s17 = scalar_lea.vmem %s592_s29, 128  ;;  %s3014_s30 = smov [#allocation3]  }
  0x44   : > { %p2958_p11 = scmp.ne.s32.totalorder %s592_s29, %s2957_s17  ;;  %s2962_s2 = sshll.u32 %s3014_s30, 4  ;;  %s2963_s2 = int_to_ptr.vmem [resolvable:$false] %s2962_s2 }
  0x45   : > { %s2964_s18 = scalar_lea.vmem %s2963_s2, 256  ;;  %p2965_p13 = scmp.lt.s32.totalorder %s592_s29, %s2963_s2 }
  0x46   : > { %p2960_p1 = pnand %p2958_p11, %p2946_p2  ;;  %p2966_p0 = scmp.lt.s32.totalorder %s2964_s18, %s2957_s17 }
  0x48   : > { %p2961_p4 = pneg %p2960_p1  ;;  %p2967_p3 = por %p2966_p0, %p2965_p13 }
  0x4a   : > { %p2968_p5 = pnand %p2967_p3, %p2961_p4 }
  0x4c   : > { %2971 = shalt.err (!%p2968_p5)
}
  0x4d   : > { %2812 = dma.hbm_to_vmem [thread:$0]  (!%p3212_p7), %s3210_s22, 128, %s592_s29, %s581_s28  }
  0x4e   : > { %p3669_p6 = scmp.ne.s32.totalorder %s3661_s26, 0 }
  0x4f   : > { %s608_s20 = sand.u32 (!%p3669_p6), 1, %s3002_s24   ;;  %p3670_p2 = scmp.ne.s32.totalorder (!%p3669_p6), %s3660_s3, 0 }
  0x50   : > { %606 = sbr.rel (%p3669_p6) target bundleno = 5523 (0x1593), region = 100  ;;  %s2478_s25 = sshll.u32 (!%p3669_p6), %s608_s20, 3 }
  0x51   : > { %s609_s0 = scalar_lea.sflag (!%p3669_p6), [#allocation4], %s608_s20  ;;  %s612_s27 = scalar_lea.vmem (!%p3669_p6), [#allocation3], %s2478_s25 }
  0x55   : > { %2989 = dma.done.wait (%p3670_p2), %s609_s0, 128  }
  0x56   : > { %2991 = vsyncadd (%p3670_p2), %s609_s0, 4294967168  ;;  %p3671_p5 = scmp.eq.s32.totalorder %s3150_s19, 0 }
  0x58   : > { %2993 = dma.done.wait (%p3671_p5), [#allocation6], 32   ;;  %p3672_p9 = pmov %p3671_p5 }
  0x59   : > { %vm688_vm0 = vcmask 261120   ;;  %v684_v1 = vld [vmem:[%s612_s27] sm:$0xff]  ;;  %s3673_s3 = sld [smem:[#allocation17_spill]]  ;;  %v3015_v9 = vmov 0.0   ;;  %vm3016_vm1 = vmmov 0   ;;  %s3017_s30 = smov 112  }
  0x5a   : > { %2995 = vsyncadd (%p3672_p9), [#allocation6], 4294967264  ;;  %v689_v2 = vsel %vm688_vm0, %v684_v1, 0.0  ;;  %2626 = vmatprep.subr.mxu0 %v3015_v9  ;;  %2634 = vmatprep.mubr.msk.f32.mxu0 %vm3016_vm1, %v3015_v9  ;;  %v2481_v17 = vld [vmem:[#allocation5] ss:$0 sm:$0xff]  ;;  %s3018_s20 = smov 96  }
  0x5b   : > { %690 = vadd.xlane.f32.xlu0 %v689_v2  ;;  %2637 = vmatprep.subr.mxu1 %v3015_v9  ;;  %v2482_v19 = vld [vmem:[#allocation7] ss:$0 sm:$0xff]  ;;  %v2483_v22 = vld [vmem:[%s3626_s5] ss:$0 sm:$0xff]  ;;  %s3019_s25 = smov 80   ;;  %vm804_vm2 = vcmask 130048  }
  0x5c   : > { %2639 = vmatprep.mubr.msk.f32.mxu1 %vm3016_vm1, %v3015_v9  ;;  %p678_p7 = scmp.lt.s32.totalorder %s3150_s19, 1  ;;  %s3674_s18 = sld [smem:[#allocation14_spill]]  ;;  %vm887_vm3 = vcmask 64512   ;;  %v1150_v58 = vld [vmem:[%s3627_s6 + $0x18] sm:$0xff]  ;;  %v1149_v59 = vld [vmem:[%s3627_s6 + $0x10] sm:$0xff]  ;;  %v1148_v60 = vld [vmem:[%s3627_s6 + $0x8] sm:$0xff] }
  0x5d   : > { %s3020_s26 = smov 48   ;;  %s3021_s22 = smov 64   ;;  %v1147_v61 = vld [vmem:[%s3627_s6] sm:$0xff]  ;;  %vm1365_vm4 = vcmask 523264   ;;  %vm2381_vm5 = vcmask 0  }
  0x5e   : > { %s3684_s19 = smov (!%p678_p7, %s3150_s19), 1  ;;  %s3675_s27 = sld [smem:[#allocation19_spill]] }
  0x5f   : > { %v720_v8 = vld [vmem:[%s3673_s3 + $0x18] sm:$0xff]  ;;  %v719_v10 = vld [vmem:[%s3673_s3 + $0x10] sm:$0xff]  ;;  %v718_v11 = vld [vmem:[%s3673_s3 + $0x8] sm:$0xff]  ;;  %s3676_s28 = sld [smem:[#allocation18_spill]] }
  0x60   : > { %2627 = vmatpush3.msra.mxu0 %v720_v8  ;;  %v717_v12 = vld [vmem:[%s3673_s3] sm:$0xff]  ;;  %s3677_s17 = sld [smem:[#allocation20_spill]] }
  0x61   : > { %2628 = vmatprep.subr.mxu0 %v3015_v9 }
  0x62   : > { %2629 = vmatpush3.msra.mxu0 %v719_v10  ;;  %s680_s2 = scalar_lea.vmem %s3674_s18, %s3684_s19  ;;  %s3022_s18 = smov 16  }
  0x63   : > { %2630 = vmatprep.subr.mxu0 %v3015_v9  ;;  %v3295_v30 = vld [vmem:[%s680_s2] ss:$0 sm:$0xff] }
  0x64   : > { %2631 = vmatpush3.msra.mxu0 %v718_v11 }
  0x65   : > { %2632 = vmatprep.subr.mxu0 %v3015_v9 }
  0x66   : > { %2633 = vmatpush3.msra.mxu0 %v717_v12  ;;  %s683_s0 = scalar_lea.vmem %s3677_s17, %s3684_s19 }
  0x67   : > { %2647 = vmatprep.subr.mxu0 %v3015_v9 }
  0xe4   : > { %v691_v3 = vpop.xlane.xlu0 %690 }
  0xe5   : > { %v693_v4 = vmul.f32 0.03125, %v691_v3 }
  0xe7   : > { %v694_v5 = vsub.f32 %v684_v1, %v693_v4  ;;  %v2492_v4 = vld [vmem:[%s3628_s7] ss:$0 sm:$0xff] }
  0xe9   : > { %v695_v6 = vmul.f32 %v694_v5, %v694_v5 }
  0xeb   : > { %v696_v7 = vsel %vm688_vm0, %v695_v6, 0.0 }
  0xec   : > { %697 = vadd.xlane.f32.xlu0 %v696_v7 }
 0x175   : > { %v698_v13 = vpop.xlane.xlu0 %697 }
 0x176   : > { %v699_v14 = vmul.f32 0.03125, %v698_v13 }
 0x178   : > { %v700_v15 = vadd.f32 1e-12, %v699_v14 }
 0x17a   : > { %2860 = vrsqrt.f32 %v700_v15 }
 0x187   : > { %v2861_v16 = vpop.eup %2860 }
 0x188   : > { %v702_v18 = vmul.f32 %v2861_v16, %v694_v5  ;;  %v1264_v16 = vld [vmem:[%s3631_s10 + $0x18] sm:$0xff] }
 0x18a   : > { %v709_v20 = vmul.f32 %v2481_v17, %v702_v18  ;;  %v1263_v17 = vld [vmem:[%s3631_s10 + $0x10] sm:$0xff]  ;;  %v1262_v18 = vld [vmem:[%s3631_s10 + $0x8] sm:$0xff] }
 0x18c   : > { %v3265_v21 = vadd.f32 %v2482_v19, %v709_v20  ;;  %v1261_v19 = vld [vmem:[%s3631_s10] sm:$0xff] }
 0x18e   : > { %2635 = vmatmul.mubr.msk.f32.vlgmr.msra.gmra.mxu0 %vm688_vm0, %v3265_v21 }
 0x18f   : > { %2649 = vmatprep.mubr.msk.f32.mxu0 %vm3016_vm1, %v3015_v9 }
 0x24e   : > { %v797_v23 = vpop.f32.mrf.mxu0 }
 0x24f   : > { %v798_v24 = vadd.f32 %v2483_v22, %v797_v23 }
 0x250   : > { %v2636_v25 = vpop.f32.mrf.mxu0 }
 0x251   : > { %975 = vrot.lane.b32.xlu0 %v798_v24, %s3017_s30  ;;  %802 = vrot.lane.b32.xlu1 %v798_v24, %s3018_s20 }
 0x255   : > { %977 = vrot.lane.b32.xlu1 %v798_v24, %s3019_s25 }
 0x2c3   : > { %v803_v26 = vpop.permute.xlu1 %802  ;;  %v976_v28 = vpop.permute.xlu0 %975 }
 0x2c4   : > { %2638 = vmatpush3.xpose.msk.msra.mxu1 %vm804_vm2, %v803_v26  ;;  %v2495_v26 = vld [vmem:[%s3630_s9] ss:$0 sm:$0xff] }
 0x2c5   : > { %2642 = vmatprep.subr.mxu1 %v3015_v9 }
 0x2c7   : > { %2640 = vmatmul.mubr.msk.f32.vlgmr.msra.gmra.mxu1 %vm804_vm2, %v798_v24  ;;  %v978_v27 = vpop.permute.xlu1 %977 }
 0x2c8   : > { %2648 = vmatpush3.xpose.msk.msra.mxu0 %vm804_vm2, %v978_v27  ;;  %2644 = vmatprep.mubr.msk.f32.mxu1 %vm3016_vm1, %v3015_v9 }
 0x2c9   : > { %2657 = vmatprep.subr.mxu0 %v3015_v9 }
 0x2cb   : > { %2650 = vmatmul.mubr.msk.f32.vlgmr.msra.gmra.mxu0 %vm804_vm2, %v976_v28 }
 0x2cc   : > { %2665 = vmatprep.mubr.msk.f32.mxu0 %vm3016_vm1, %v3015_v9  ;;  %2658 = vmatpush3.msra.mxu0 %v1150_v58  ;;  %v2505_v58 = vld [vmem:[%s3673_s3 + $0x38] sm:$0xff] }
 0x2cd   : > { %2659 = vmatprep.subr.mxu0 %v3015_v9 }
 0x2ce   : > { %2660 = vmatpush3.msra.mxu0 %v1149_v59  ;;  %v2504_v59 = vld [vmem:[%s3673_s3 + $0x30] sm:$0xff] }
 0x2cf   : > { %2661 = vmatprep.subr.mxu0 %v3015_v9 }
 0x2d0   : > { %2662 = vmatpush3.msra.mxu0 %v1148_v60  ;;  %v2503_v60 = vld [vmem:[%s3673_s3 + $0x28] sm:$0xff] }
 0x2d1   : > { %2663 = vmatprep.subr.mxu0 %v3015_v9 }
 0x2d2   : > { %2664 = vmatpush3.msra.mxu0 %v1147_v61  ;;  %v2502_v61 = vld [vmem:[%s3673_s3 + $0x20] sm:$0xff] }
 0x2d3   : > { %2679 = vmatprep.subr.mxu0 %v3015_v9 }
 0x387   : > { %v875_v29 = vpop.f32.mrf.mxu1 }
 0x388   : > { %v879_v31 = vmul.f32 0.25, %v875_v29  ;;  %v1357_v29 = vld [vmem:[%s3633_s12 + $0x38] sm:$0xff] }
 0x389   : > { %v2641_v32 = vpop.f32.mrf.mxu1 }
 0x38a   : > { %v886_v33 = vadd.f32 %v3295_v30, %v879_v31  ;;  %v1356_v31 = vld [vmem:[%s3633_s12 + $0x30] sm:$0xff]  ;;  %v1355_v32 = vld [vmem:[%s3633_s12 + $0x28] sm:$0xff] }
 0x38b   : > { %v1049_v34 = vpop.f32.mrf.mxu0 }
 0x38c   : > { %v1053_v35 = vmul.f32 0.25, %v1049_v34  ;;  %v888_v36 = vsel %vm887_vm3, %v886_v33, -inf  ;;  %v1353_v34 = vld [vmem:[%s3633_s12 + $0x18] sm:$0xff] }
 0x38d   : > { %889 = vmax.xlane.f32.xlu1 %v888_v36  ;;  %v2651_v37 = vpop.f32.mrf.mxu0  ;;  %v1351_v36 = vld [vmem:[%s3633_s12 + $0x8] sm:$0xff] }
 0x38e   : > { %v1054_v38 = vadd.f32 %v3295_v30, %v1053_v35  ;;  %v1352_v35 = vld [vmem:[%s3633_s12 + $0x10] sm:$0xff]  ;;  %v1350_v37 = vld [vmem:[%s3633_s12] sm:$0xff] }
 0x390   : > { %v1055_v39 = vsel %vm887_vm3, %v1054_v38, -inf }
 0x391   : > { %1056 = vmax.xlane.f32.xlu0 %v1055_v39 }
 0x3a7   : > { %1066 = vrot.lane.b32.xlu0 %v798_v24, %s3020_s26 }
 0x416   : > { %v890_v40 = vpop.xlane.xlu1 %889 }
 0x417   : > { %v891_v41 = vsub.f32 %v886_v33, %v890_v40  ;;  %v1354_v33 = vld [vmem:[%s3633_s12 + $0x20] sm:$0xff] }
 0x419   : > { %v892_v42 = vmul.f32 1.442695, %v891_v41 }
 0x41a   : > { %v1057_v43 = vpop.xlane.xlu0 %1056 }
 0x41b   : > { %2862 = vpow2.f32 %v892_v42  ;;  %v1058_v44 = vsub.f32 %v1054_v38, %v1057_v43  ;;  %v2496_v38 = vld [vmem:[%s3632_s11] ss:$0 sm:$0xff] }
 0x41d   : > { %v1059_v45 = vmul.f32 1.442695, %v1058_v44 }
 0x41e   : > { %v1067_v55 = vpop.permute.xlu0 %1066 }
 0x41f   : > { %2864 = vpow2.f32 %v1059_v45 }
 0x428   : > { %v2863_v46 = vpop.eup %2862 }
 0x429   : > { %v894_v47 = vsel %vm887_vm3, %v2863_v46, 0.0 }
 0x42a   : > { %895 = vadd.xlane.f32.xlu1 %v894_v47  ;;  %v2498_v47 = vld [vmem:[%s3634_s13] ss:$0 sm:$0xff] }
 0x42c   : > { %v2865_v48 = vpop.eup %2864 }
 0x42d   : > { %v1061_v49 = vsel %vm887_vm3, %v2865_v48, 0.0 }
 0x42e   : > { %1062 = vadd.xlane.f32.xlu1 %v1061_v49 }
 0x43f   : > { %899 = vrot.lane.b32.xlu1 %v798_v24, %s3021_s22  ;;  %v2494_v24 = vld [vmem:[%s3629_s8] ss:$0 sm:$0xff] }
 0x4b3   : > { %v896_v50 = vpop.xlane.xlu1 %895 }
 0x4b4   : > { %2866 = vrcp.f32 %v896_v50 }
 0x4b7   : > { %v1063_v51 = vpop.xlane.xlu1 %1062 }
 0x4b8   : > { %2868 = vrcp.f32 %v1063_v51 }
 0x4bb   : > { %v900_v52 = vpop.permute.xlu1 %899 }
 0x4bc   : > { %2643 = vmatpush3.msra.mxu1 %v900_v52 }
 0x4bd   : > { %2652 = vmatprep.subr.mxu1 %v3015_v9 }
 0x4c1   : > { %v2867_v53 = vpop.eup %2866 }
 0x4c2   : > { %v898_v54 = vmul.f32 %v2867_v53, %v2863_v46 }
 0x4c4   : > { %2645 = vmatmul.mubr.msk.f32.vlgmr.msra.gmra.mxu1 %vm887_vm3, %v898_v54 }
 0x4c5   : > { %v2869_v56 = vpop.eup %2868  ;;  %2653 = vmatpush3.msra.mxu1 %v1067_v55  ;;  %2654 = vmatprep.mubr.msk.f32.mxu1 %vm3016_vm1, %v3015_v9 }
 0x4c6   : > { %v1065_v57 = vmul.f32 %v2869_v56, %v2865_v48  ;;  %2668 = vmatprep.subr.mxu1 %v3015_v9 }
 0x4c8   : > { %2655 = vmatmul.mubr.msk.f32.vlgmr.msra.gmra.mxu1 %vm887_vm3, %v1065_v57 }
 0x4c9   : > { %2676 = vmatprep.mubr.msk.f32.mxu1 %vm3016_vm1, %v3015_v9  ;;  %2669 = vmatpush3.msra.mxu1 %v1264_v16 }
 0x4ca   : > { %2670 = vmatprep.subr.mxu1 %v3015_v9 }
 0x4cb   : > { %2671 = vmatpush3.msra.mxu1 %v1263_v17 }
 0x4cc   : > { %2672 = vmatprep.subr.mxu1 %v3015_v9 }
 0x4cd   : > { %2673 = vmatpush3.msra.mxu1 %v1262_v18 }
 0x4ce   : > { %2674 = vmatprep.subr.mxu1 %v3015_v9 }
 0x4cf   : > { %2675 = vmatpush3.msra.mxu1 %v1261_v19 }
 0x4d0   : > { %2698 = vmatprep.subr.mxu1 %v3015_v9 }
 0x584   : > { %v971_v62 = vpop.f32.mrf.mxu1 }
 0x586   : > { %v2646_v63 = vpop.f32.mrf.mxu1 }
 0x588   : > { %v1138_v0 = vpop.f32.mrf.mxu1 }
 0x589   : > { %1143 = vrot.lane.b32.xlu1 %v1138_v0, %s3022_s18 }
 0x58a   : > { %v2656_v1 = vpop.f32.mrf.mxu1 }
 0x5fb   : > { %v1144_v2 = vpop.permute.xlu1 %1143 }
 0x5fc   : > { %v1146_v3 = vsel %vm804_vm2, %v971_v62, %v1144_v2  ;;  %v2500_v2 = vld [vmem:[%s3635_s14] ss:$0 sm:$0xff] }
 0x5fd   : > { %2666 = vmatmul.mubr.msk.f32.vlgmr.msra.gmra.mxu0 %vm688_vm0, %v1146_v3 }
 0x5fe   : > { %2695 = vmatprep.mubr.msk.f32.mxu0 %vm3016_vm1, %v3015_v9  ;;  %2680 = vmatpush3.msra.mxu0 %v1357_v29 }
 0x5ff   : > { %2681 = vmatprep.subr.mxu0 %v3015_v9 }
 0x600   : > { %2682 = vmatpush3.msra.mxu0 %v1356_v31 }
 0x601   : > { %2683 = vmatprep.subr.mxu0 %v3015_v9 }
 0x602   : > { %2684 = vmatpush3.msra.mxu0 %v1355_v32 }
 0x603   : > { %2685 = vmatprep.subr.mxu0 %v3015_v9 }
 0x604   : > { %2686 = vmatpush3.msra.mxu0 %v1354_v33 }
 0x605   : > { %2687 = vmatprep.subr.mxu0 %v3015_v9 }
 0x606   : > { %2688 = vmatpush3.msra.mxu0 %v1353_v34 }
 0x607   : > { %2689 = vmatprep.subr.mxu0 %v3015_v9 }
 0x608   : > { %2690 = vmatpush3.msra.mxu0 %v1352_v35 }
 0x609   : > { %2691 = vmatprep.subr.mxu0 %v3015_v9 }
 0x60a   : > { %2692 = vmatpush3.msra.mxu0 %v1351_v36 }
 0x60b   : > { %2693 = vmatprep.subr.mxu0 %v3015_v9 }
 0x60c   : > { %2694 = vmatpush3.msra.mxu0 %v1350_v37 }
 0x60d   : > { %2719 = vmatprep.subr.mxu0 %v3015_v9 }
 0x6bd   : > { %v1227_v5 = vpop.f32.mrf.mxu0 }
 0x6be   : > { %v1228_v6 = vadd.f32 %v2492_v4, %v1227_v5  ;;  %v2501_v4 = vld [vmem:[%s3636_s15] ss:$0 sm:$0xff] }
 0x6bf   : > { %v2667_v7 = vpop.f32.mrf.mxu0 }
 0x6c0   : > { %v1231_v8 = vadd.f32 %v1228_v6, %v3265_v21  ;;  %v2507_v7 = vld [vmem:[%s3626_s5 + $0x1] ss:$0 sm:$0xff] }
 0x6c2   : > { %v1234_v10 = vsel %vm688_vm0, %v1231_v8, 0.0 }
 0x6c3   : > { %1235 = vadd.xlane.f32.xlu1 %v1234_v10 }
 0x74c   : > { %v1236_v11 = vpop.xlane.xlu1 %1235 }
 0x74d   : > { %v1237_v12 = vmul.f32 0.03125, %v1236_v11 }
 0x74f   : > { %v1238_v13 = vsub.f32 %v1231_v8, %v1237_v12 }
 0x751   : > { %v1239_v14 = vmul.f32 %v1238_v13, %v1238_v13 }
 0x753   : > { %v1240_v15 = vsel %vm688_vm0, %v1239_v14, 0.0 }
 0x754   : > { %1241 = vadd.xlane.f32.xlu0 %v1240_v15 }
 0x7dd   : > { %v1242_v20 = vpop.xlane.xlu0 %1241 }
 0x7de   : > { %v1243_v21 = vmul.f32 0.03125, %v1242_v20 }
 0x7e0   : > { %v1244_v22 = vadd.f32 1e-12, %v1243_v21 }
 0x7e2   : > { %2870 = vrsqrt.f32 %v1244_v22 }
 0x7ef   : > { %v2871_v23 = vpop.eup %2870 }
 0x7f0   : > { %v1246_v25 = vmul.f32 %v2871_v23, %v1238_v13 }
 0x7f2   : > { %v1253_v27 = vmul.f32 %v2494_v24, %v1246_v25 }
 0x7f4   : > { %v1260_v28 = vadd.f32 %v2495_v26, %v1253_v27 }
 0x7f6   : > { %2677 = vmatmul.mubr.msk.f32.vlgmr.msra.gmra.mxu1 %vm688_vm0, %v1260_v28 }
 0x7f7   : > { %2706 = vmatprep.mubr.msk.f32.mxu1 %vm3016_vm1, %v3015_v9  ;;  %2699 = vmatpush3.msra.mxu1 %v2505_v58 }
 0x7f8   : > { %2700 = vmatprep.subr.mxu1 %v3015_v9 }
 0x7f9   : > { %2701 = vmatpush3.msra.mxu1 %v2504_v59 }
 0x7fa   : > { %2702 = vmatprep.subr.mxu1 %v3015_v9 }
 0x7fb   : > { %2703 = vmatpush3.msra.mxu1 %v2503_v60 }
 0x7fc   : > { %2704 = vmatprep.subr.mxu1 %v3015_v9 }
 0x7fd   : > { %2705 = vmatpush3.msra.mxu1 %v2502_v61 }
 0x7fe   : > { %2709 = vmatprep.subr.mxu1 %v3015_v9 }
 0x8b6   : > { %v1341_v39 = vpop.f32.mrf.mxu1 }
 0x8b7   : > { %v1342_v40 = vadd.f32 %v2496_v38, %v1341_v39 }
 0x8b8   : > { %v2678_v41 = vpop.f32.mrf.mxu1 }
 0x8b9   : > { %v1346_v42 = vmul.f32 0.70710677, %v1342_v40  ;;  %v1345_v44 = vmul.f32 0.5, %v1342_v40 }
 0x8bb   : > { %2872 = verf.f32 %v1346_v42 }
 0x8c8   : > { %v2873_v43 = vpop.eup %2872 }
 0x8c9   : > { %v1348_v45 = vadd.f32 1.0, %v2873_v43  ;;  %v2518_v43 = vld [vmem:[%s3627_s6 + $0x38] sm:$0xff] }
 0x8cb   : > { %v1349_v46 = vmul.f32 %v1348_v45, %v1345_v44  ;;  %v2517_v44 = vld [vmem:[%s3627_s6 + $0x30] sm:$0xff]  ;;  %v2516_v45 = vld [vmem:[%s3627_s6 + $0x28] sm:$0xff] }
 0x8cd   : > { %2696 = vmatmul.mubr.msk.f32.vlgmr.msra.gmra.mxu0 %vm1365_vm4, %v1349_v46  ;;  %v2515_v46 = vld [vmem:[%s3627_s6 + $0x20] sm:$0xff] }
 0x8ce   : > { %2721 = vmatprep.mubr.msk.f32.mxu0 %vm3016_vm1, %v3015_v9 }
 0x98d   : > { %v1435_v48 = vpop.f32.mrf.mxu0 }
 0x98e   : > { %v1436_v49 = vadd.f32 %v2498_v47, %v1435_v48 }
 0x98f   : > { %v2697_v50 = vpop.f32.mrf.mxu0 }
 0x990   : > { %v1439_v51 = vadd.f32 %v1436_v49, %v1260_v28 }
 0x992   : > { %v1442_v52 = vsel %vm688_vm0, %v1439_v51, 0.0 }
 0x993   : > { %1443 = vadd.xlane.f32.xlu1 %v1442_v52 }
 0xa1c   : > { %v1444_v53 = vpop.xlane.xlu1 %1443 }
 0xa1d   : > { %v1445_v54 = vmul.f32 0.03125, %v1444_v53  ;;  %v2520_v53 = vld [vmem:[%s3628_s7 + $0x1] ss:$0 sm:$0xff] }
 0xa1f   : > { %v1446_v55 = vsub.f32 %v1439_v51, %v1445_v54 }
 0xa21   : > { %v1447_v56 = vmul.f32 %v1446_v55, %v1446_v55 }
 0xa23   : > { %v1448_v57 = vsel %vm688_vm0, %v1447_v56, 0.0 }
 0xa24   : > { %1449 = vadd.xlane.f32.xlu1 %v1448_v57 }
 0xaad   : > { %v1450_v62 = vpop.xlane.xlu1 %1449 }
 0xaae   : > { %v1451_v63 = vmul.f32 0.03125, %v1450_v62 }
 0xab0   : > { %v1452_v0 = vadd.f32 1e-12, %v1451_v63 }
 0xab2   : > { %2874 = vrsqrt.f32 %v1452_v0  ;;  %v2529_v0 = vld [vmem:[%s3631_s10 + $0x38] sm:$0xff] }
 0xabf   : > { %v2875_v1 = vpop.eup %2874 }
 0xac0   : > { %v1454_v3 = vmul.f32 %v2875_v1, %v1446_v55  ;;  %v2528_v1 = vld [vmem:[%s3631_s10 + $0x30] sm:$0xff] }
 0xac2   : > { %v1461_v5 = vmul.f32 %v2500_v2, %v1454_v3  ;;  %v2527_v2 = vld [vmem:[%s3631_s10 + $0x28] sm:$0xff]  ;;  %v2526_v3 = vld [vmem:[%s3631_s10 + $0x20] sm:$0xff] }
 0xac4   : > { %v3430_v6 = vadd.f32 %v2501_v4, %v1461_v5 }
 0xac6   : > { %2707 = vmatmul.mubr.msk.f32.vlgmr.msra.gmra.mxu1 %vm688_vm0, %v3430_v6 }
 0xac7   : > { %2711 = vmatprep.mubr.msk.f32.mxu1 %vm3016_vm1, %v3015_v9 }
 0xb86   : > { %v1551_v8 = vpop.f32.mrf.mxu1 }
 0xb87   : > { %v1552_v10 = vadd.f32 %v2507_v7, %v1551_v8  ;;  %v2524_v8 = vld [vmem:[%s3629_s8 + $0x1] ss:$0 sm:$0xff] }
 0xb88   : > { %v2708_v11 = vpop.f32.mrf.mxu1 }
 0xb89   : > { %1723 = vrot.lane.b32.xlu1 %v1552_v10, %s3019_s25  ;;  %1556 = vrot.lane.b32.xlu0 %v1552_v10, %s3018_s20  ;;  %v2525_v11 = vld [vmem:[%s3630_s9 + $0x1] ss:$0 sm:$0xff] }
 0xb8d   : > { %1721 = vrot.lane.b32.xlu1 %v1552_v10, %s3017_s30 }
 0xbfb   : > { %v1724_v12 = vpop.permute.xlu1 %1723  ;;  %v1557_v13 = vpop.permute.xlu0 %1556 }
 0xbfc   : > { %2710 = vmatpush3.xpose.msk.msra.mxu1 %vm804_vm2, %v1557_v13  ;;  %2720 = vmatpush3.xpose.msk.msra.mxu0 %vm804_vm2, %v1724_v12 }
 0xbfd   : > { %2714 = vmatprep.subr.mxu1 %v3015_v9  ;;  %2729 = vmatprep.subr.mxu0 %v3015_v9 }
 0xbff   : > { %v1722_v14 = vpop.permute.xlu1 %1721  ;;  %2712 = vmatmul.mubr.msk.f32.vlgmr.msra.gmra.mxu1 %vm804_vm2, %v1552_v10 }
 0xc00   : > { %2722 = vmatmul.mubr.msk.f32.vlgmr.msra.gmra.mxu0 %vm804_vm2, %v1722_v14  ;;  %2716 = vmatprep.mubr.msk.f32.mxu1 %vm3016_vm1, %v3015_v9  ;;  %v2540_v14 = vld [vmem:[%s3633_s12 + $0x78] sm:$0xff] }
 0xc01   : > { %2737 = vmatprep.mubr.msk.f32.mxu0 %vm3016_vm1, %v3015_v9  ;;  %2730 = vmatpush3.msra.mxu0 %v2518_v43  ;;  %v2226_v43 = vld [vmem:[%s3637_s16 + $0x10] sm:$0xff] }
 0xc02   : > { %2731 = vmatprep.subr.mxu0 %v3015_v9 }
 0xc03   : > { %2732 = vmatpush3.msra.mxu0 %v2517_v44  ;;  %v2225_v44 = vld [vmem:[%s3637_s16 + $0x8] sm:$0xff] }
 0xc04   : > { %2733 = vmatprep.subr.mxu0 %v3015_v9 }
 0xc05   : > { %2734 = vmatpush3.msra.mxu0 %v2516_v45  ;;  %v2224_v45 = vld [vmem:[%s3637_s16] sm:$0xff] }
 0xc06   : > { %2735 = vmatprep.subr.mxu0 %v3015_v9 }
 0xc07   : > { %2736 = vmatpush3.msra.mxu0 %v2515_v46 }
 0xc08   : > { %2751 = vmatprep.subr.mxu0 %v3015_v9 }
 0xcbf   : > { %v1628_v15 = vpop.f32.mrf.mxu1 }
 0xcc0   : > { %v1632_v16 = vmul.f32 0.25, %v1628_v15  ;;  %v1795_v17 = vpop.f32.mrf.mxu0  ;;  %v2539_v15 = vld [vmem:[%s3633_s12 + $0x70] sm:$0xff] }
 0xcc1   : > { %v1799_v18 = vmul.f32 0.25, %v1795_v17  ;;  %v2713_v19 = vpop.f32.mrf.mxu1  ;;  %v2537_v17 = vld [vmem:[%s3633_s12 + $0x60] sm:$0xff] }
 0xcc2   : > { %v2723_v20 = vpop.f32.mrf.mxu0  ;;  %v1633_v21 = vadd.f32 %v3295_v30, %v1632_v16  ;;  %v2538_v16 = vld [vmem:[%s3633_s12 + $0x68] sm:$0xff]  ;;  %v2535_v19 = vld [vmem:[%s3633_s12 + $0x50] sm:$0xff] }
 0xcc3   : > { %v1800_v22 = vadd.f32 %v3295_v30, %v1799_v18  ;;  %v2536_v18 = vld [vmem:[%s3633_s12 + $0x58] sm:$0xff]  ;;  %v2534_v20 = vld [vmem:[%s3633_s12 + $0x48] sm:$0xff] }
 0xcc4   : > { %v1634_v23 = vsel %vm887_vm3, %v1633_v21, -inf }
 0xcc5   : > { %1635 = vmax.xlane.f32.xlu0 %v1634_v23  ;;  %v1801_v24 = vsel %vm887_vm3, %v1800_v22, -inf }
 0xcc6   : > { %1802 = vmax.xlane.f32.xlu1 %v1801_v24 }
 0xcd7   : > { %1645 = vrot.lane.b32.xlu1 %v1552_v10, %s3021_s22 }
 0xd4e   : > { %v1636_v25 = vpop.xlane.xlu0 %1635 }
 0xd4f   : > { %v1637_v26 = vsub.f32 %v1633_v21, %v1636_v25  ;;  %v1803_v27 = vpop.xlane.xlu1 %1802  ;;  %v2533_v21 = vld [vmem:[%s3633_s12 + $0x40] sm:$0xff] }
 0xd50   : > { %v1804_v28 = vsub.f32 %v1800_v22, %v1803_v27  ;;  %v2531_v22 = vld [vmem:[%s3632_s11 + $0x1] ss:$0 sm:$0xff] }
 0xd51   : > { %v1638_v29 = vmul.f32 1.442695, %v1637_v26 }
 0xd52   : > { %v1805_v31 = vmul.f32 1.442695, %v1804_v28 }
 0xd53   : > { %2876 = vpow2.f32 %v1638_v29  ;;  %v1646_v32 = vpop.permute.xlu1 %1645 }
 0xd54   : > { %2715 = vmatpush3.msra.mxu1 %v1646_v32  ;;  %2878 = vpow2.f32 %v1805_v31  ;;  %v2542_v32 = vld [vmem:[%s3634_s13 + $0x1] ss:$0 sm:$0xff] }
 0xd55   : > { %2724 = vmatprep.subr.mxu1 %v3015_v9 }
 0xd60   : > { %v2877_v30 = vpop.eup %2876 }
 0xd61   : > { %v1640_v33 = vsel %vm887_vm3, %v2877_v30, 0.0  ;;  %v2879_v34 = vpop.eup %2878 }
 0xd62   : > { %1641 = vadd.xlane.f32.xlu0 %v1640_v33  ;;  %v1807_v35 = vsel %vm887_vm3, %v2879_v34, 0.0 }
 0xd66   : > { %1808 = vadd.xlane.f32.xlu0 %v1807_v35 }
 0xd7c   : > { %1812 = vrot.lane.b32.xlu0 %v1552_v10, %s3020_s26 }
 0xdeb   : > { %v1642_v36 = vpop.xlane.xlu0 %1641 }
 0xdec   : > { %2880 = vrcp.f32 %v1642_v36 }
 0xdef   : > { %v1809_v37 = vpop.xlane.xlu0 %1808 }
 0xdf0   : > { %2882 = vrcp.f32 %v1809_v37 }
 0xdf3   : > { %v1813_v40 = vpop.permute.xlu0 %1812 }
 0xdf9   : > { %v2881_v38 = vpop.eup %2880 }
 0xdfa   : > { %v1644_v39 = vmul.f32 %v2881_v38, %v2877_v30 }
 0xdfc   : > { %2717 = vmatmul.mubr.msk.f32.vlgmr.msra.gmra.mxu1 %vm887_vm3, %v1644_v39 }
 0xdfd   : > { %v2883_v41 = vpop.eup %2882  ;;  %2725 = vmatpush3.msra.mxu1 %v1813_v40  ;;  %2726 = vmatprep.mubr.msk.f32.mxu1 %vm3016_vm1, %v3015_v9 }
 0xdfe   : > { %v1811_v42 = vmul.f32 %v2883_v41, %v2879_v34  ;;  %2740 = vmatprep.subr.mxu1 %v3015_v9 }
 0xe00   : > { %2727 = vmatmul.mubr.msk.f32.vlgmr.msra.gmra.mxu1 %vm887_vm3, %v1811_v42  ;;  %v2227_v42 = vld [vmem:[%s3637_s16 + $0x18] sm:$0xff] }
 0xe01   : > { %2748 = vmatprep.mubr.msk.f32.mxu1 %vm3016_vm1, %v3015_v9  ;;  %2741 = vmatpush3.msra.mxu1 %v2529_v0  ;;  %v2307_v0 = vld [vmem:[#allocation2] sm:$0x1] }
 0xe02   : > { %2742 = vmatprep.subr.mxu1 %v3015_v9 }
 0xe03   : > { %2743 = vmatpush3.msra.mxu1 %v2528_v1 }
 0xe04   : > { %2744 = vmatprep.subr.mxu1 %v3015_v9 }
 0xe05   : > { %2745 = vmatpush3.msra.mxu1 %v2527_v2 }
 0xe06   : > { %2746 = vmatprep.subr.mxu1 %v3015_v9 }
 0xe07   : > { %2747 = vmatpush3.msra.mxu1 %v2526_v3 }
 0xe08   : > { %2770 = vmatprep.subr.mxu1 %v3015_v9 }
 0xebc   : > { %v1717_v47 = vpop.f32.mrf.mxu1 }
 0xebe   : > { %v2718_v48 = vpop.f32.mrf.mxu1 }
 0xec0   : > { %v1884_v49 = vpop.f32.mrf.mxu1 }
 0xec1   : > { %1889 = vrot.lane.b32.xlu1 %v1884_v49, %s3022_s18 }
 0xec2   : > { %v2728_v50 = vpop.f32.mrf.mxu1 }
 0xec3   : > { %v2546_v50 = vld [vmem:[%s3635_s14 + $0x1] ss:$0 sm:$0xff] }
 0xf33   : > { %v1890_v51 = vpop.permute.xlu1 %1889 }
 0xf34   : > { %v1892_v52 = vsel %vm804_vm2, %v1717_v47, %v1890_v51 }
 0xf35   : > { %2738 = vmatmul.mubr.msk.f32.vlgmr.msra.gmra.mxu0 %vm688_vm0, %v1892_v52  ;;  %v2547_v52 = vld [vmem:[%s3636_s15 + $0x1] ss:$0 sm:$0xff] }
 0xf36   : > { %2767 = vmatprep.mubr.msk.f32.mxu0 %vm3016_vm1, %v3015_v9  ;;  %2752 = vmatpush3.msra.mxu0 %v2540_v14 }
 0xf37   : > { %2753 = vmatprep.subr.mxu0 %v3015_v9 }
 0xf38   : > { %2754 = vmatpush3.msra.mxu0 %v2539_v15 }
 0xf39   : > { %2755 = vmatprep.subr.mxu0 %v3015_v9 }
 0xf3a   : > { %2756 = vmatpush3.msra.mxu0 %v2538_v16 }
 0xf3b   : > { %2757 = vmatprep.subr.mxu0 %v3015_v9 }
 0xf3c   : > { %2758 = vmatpush3.msra.mxu0 %v2537_v17 }
 0xf3d   : > { %2759 = vmatprep.subr.mxu0 %v3015_v9 }
 0xf3e   : > { %2760 = vmatpush3.msra.mxu0 %v2536_v18 }
 0xf3f   : > { %2761 = vmatprep.subr.mxu0 %v3015_v9 }
 0xf40   : > { %2762 = vmatpush3.msra.mxu0 %v2535_v19 }
 0xf41   : > { %2763 = vmatprep.subr.mxu0 %v3015_v9 }
 0xf42   : > { %2764 = vmatpush3.msra.mxu0 %v2534_v20 }
 0xf43   : > { %2765 = vmatprep.subr.mxu0 %v3015_v9 }
 0xf44   : > { %2766 = vmatpush3.msra.mxu0 %v2533_v21 }
 0xff5   : > { %v1975_v54 = vpop.f32.mrf.mxu0 }
 0xff6   : > { %v1976_v55 = vadd.f32 %v2520_v53, %v1975_v54 }
 0xff7   : > { %v2739_v56 = vpop.f32.mrf.mxu0 }
 0xff8   : > { %v1979_v57 = vadd.f32 %v1976_v55, %v3430_v6  ;;  %v2306_v55 = vld [vmem:[%s3675_s27 + $0x18] sm:$0xff]  ;;  %v2305_v56 = vld [vmem:[%s3675_s27 + $0x10] sm:$0xff] }
 0xffa   : > { %v1984_v58 = vsel %vm688_vm0, %v1979_v57, 0.0 }
 0xffb   : > { %1985 = vadd.xlane.f32.xlu1 %v1984_v58  ;;  %v2303_v58 = vld [vmem:[%s3675_s27] sm:$0xff] }
0x1084   : > { %v1986_v59 = vpop.xlane.xlu1 %1985 }
0x1085   : > { %v1987_v60 = vmul.f32 0.03125, %v1986_v59  ;;  %v2228_v59 = vld [vmem:[%s3676_s28] sm:$0x1] }
0x1087   : > { %v1988_v61 = vsub.f32 %v1979_v57, %v1987_v60  ;;  %v2304_v57 = vld [vmem:[%s3675_s27 + $0x8] sm:$0xff] }
0x1089   : > { %v1989_v62 = vmul.f32 %v1988_v61, %v1988_v61 }
0x108b   : > { %v1990_v63 = vsel %vm688_vm0, %v1989_v62, 0.0 }
0x108c   : > { %1991 = vadd.xlane.f32.xlu0 %v1990_v63 }
0x1115   : > { %v1992_v4 = vpop.xlane.xlu0 %1991 }
0x1116   : > { %v1993_v5 = vmul.f32 0.03125, %v1992_v4 }
0x1118   : > { %v1994_v6 = vadd.f32 1e-12, %v1993_v5 }
0x111a   : > { %2884 = vrsqrt.f32 %v1994_v6 }
0x1127   : > { %v2885_v7 = vpop.eup %2884 }
0x1128   : > { %v1996_v10 = vmul.f32 %v2885_v7, %v1988_v61 }
0x112a   : > { %v2003_v12 = vmul.f32 %v2524_v8, %v1996_v10 }
0x112c   : > { %v2010_v13 = vadd.f32 %v2525_v11, %v2003_v12 }
0x112e   : > { %2749 = vmatmul.mubr.msk.f32.vlgmr.msra.gmra.mxu1 %vm688_vm0, %v2010_v13 }
0x112f   : > { %2778 = vmatprep.mubr.msk.f32.mxu1 %vm3016_vm1, %v3015_v9  ;;  %2771 = vmatpush3.msra.mxu1 %v2227_v42 }
0x1130   : > { %2772 = vmatprep.subr.mxu1 %v3015_v9 }
0x1131   : > { %2773 = vmatpush3.msra.mxu1 %v2226_v43 }
0x1132   : > { %2774 = vmatprep.subr.mxu1 %v3015_v9 }
0x1133   : > { %2775 = vmatpush3.msra.mxu1 %v2225_v44 }
0x1134   : > { %2776 = vmatprep.subr.mxu1 %v3015_v9 }
0x1135   : > { %2777 = vmatpush3.msra.mxu1 %v2224_v45 }
0x1136   : > { %2781 = vmatprep.subr.mxu1 %v3015_v9 }
0x11ee   : > { %v2093_v23 = vpop.f32.mrf.mxu1 }
0x11ef   : > { %v2094_v24 = vadd.f32 %v2531_v22, %v2093_v23 }
0x11f0   : > { %v2750_v25 = vpop.f32.mrf.mxu1 }
0x11f1   : > { %v2098_v26 = vmul.f32 0.70710677, %v2094_v24  ;;  %v2097_v28 = vmul.f32 0.5, %v2094_v24 }
0x11f3   : > { %2886 = verf.f32 %v2098_v26 }
0x1200   : > { %v2887_v27 = vpop.eup %2886 }
0x1201   : > { %v2100_v29 = vadd.f32 1.0, %v2887_v27 }
0x1203   : > { %v2101_v31 = vmul.f32 %v2100_v29, %v2097_v28 }
0x1205   : > { %2768 = vmatmul.mubr.msk.f32.vlgmr.msra.gmra.mxu0 %vm1365_vm4, %v2101_v31 }
0x12c5   : > { %v2188_v30 = vpop.f32.mrf.mxu0 }
0x12c6   : > { %v2189_v33 = vadd.f32 %v2542_v32, %v2188_v30 }
0x12c7   : > { %v2769_v34 = vpop.f32.mrf.mxu0 }
0x12c8   : > { %v2192_v35 = vadd.f32 %v2189_v33, %v2010_v13 }
0x12ca   : > { %v2197_v36 = vsel %vm688_vm0, %v2192_v35, 0.0 }
0x12cb   : > { %2198 = vadd.xlane.f32.xlu0 %v2197_v36 }
0x1354   : > { %v2199_v37 = vpop.xlane.xlu0 %2198 }
0x1355   : > { %v2200_v38 = vmul.f32 0.03125, %v2199_v37 }
0x1357   : > { %v2201_v39 = vsub.f32 %v2192_v35, %v2200_v38 }
0x1359   : > { %v2202_v40 = vmul.f32 %v2201_v39, %v2201_v39 }
0x135b   : > { %v2203_v41 = vsel %vm688_vm0, %v2202_v40, 0.0 }
0x135c   : > { %2204 = vadd.xlane.f32.xlu1 %v2203_v41 }
0x13e5   : > { %v2205_v46 = vpop.xlane.xlu1 %2204 }
0x13e6   : > { %v2206_v47 = vmul.f32 0.03125, %v2205_v46 }
0x13e8   : > { %v2207_v48 = vadd.f32 1e-12, %v2206_v47 }
0x13ea   : > { %2888 = vrsqrt.f32 %v2207_v48 }
0x13f7   : > { %v2889_v49 = vpop.eup %2888 }
0x13f8   : > { %v2209_v51 = vmul.f32 %v2889_v49, %v2201_v39 }
0x13fa   : > { %v2216_v53 = vmul.f32 %v2546_v50, %v2209_v51 }
0x13fc   : > { %v2223_v54 = vadd.f32 %v2547_v52, %v2216_v53 }
0x13fe   : > { %2779 = vmatmul.mubr.msk.f32.vlgmr.msra.gmra.mxu1 %vm688_vm0, %v2223_v54 }
0x13ff   : > { %2789 = vmatprep.mubr.msk.f32.mxu1 %vm3016_vm1, %v3015_v9  ;;  %2782 = vmatpush3.msra.mxu1 %v2306_v55 }
0x1400   : > { %2783 = vmatprep.subr.mxu1 %v3015_v9 }
0x1401   : > { %2784 = vmatpush3.msra.mxu1 %v2305_v56 }
0x1402   : > { %2785 = vmatprep.subr.mxu1 %v3015_v9 }
0x1403   : > { %2786 = vmatpush3.msra.mxu1 %v2304_v57 }
0x1404   : > { %2787 = vmatprep.subr.mxu1 %v3015_v9 }
0x1405   : > { %2788 = vmatpush3.msra.mxu1 %v2303_v58 }
0x14be   : > { %v2298_v60 = vpop.f32.mrf.mxu1 }
0x14bf   : > { %v2299_v61 = vadd.f32 %v2298_v60, %v2228_v59 }
0x14c0   : > { %v2780_v62 = vpop.f32.mrf.mxu1 }
0x14c1   : > { %2890 = vtanh.f32 %v2299_v61 }
0x14ce   : > { %v2891_v63 = vpop.eup %2890 }
0x14cf   : > { %2790 = vmatmul.mubr.msk.f32.vlgmr.msra.gmra.mxu1 %vm688_vm0, %v2891_v63 }
0x158f   : > { %v2377_v1 = vpop.f32.mrf.mxu1 }
0x1590   : > { %v2378_v9 = vadd.f32 %v2377_v1, %v2307_v0 }
0x1591   : > { %v2791_v2 = vpop.f32.mrf.mxu1 }
0x1592   : > { %2382 = vst.msk [vmem:[%s683_s0] sm:$0x1] %vm2381_vm5, %v2378_v9 }
0x1593 PF: > { %s3678_s25 = sld [smem:[#allocation11_spill]]  ;;  %s3681_s23 = smov %s3002_s24 }
0x1594   : > { %s3679_s18 = sld [smem:[#allocation10_spill]] }
0x1595   : > { %s3680_s2 = sld [smem:[#allocation12_spill]] }
0x1599   : > { %p33_p10 = scmp.ge.s32.totalorder %s3678_s25, 4  }
0x159a   : > { %s3682_s24 = smov %s3679_s18 }
0x159b   :  { %35 = sbr.rel (!%p33_p10) target bundleno = 13 (0xd), region = 163 }
0x15a0   :  { %2400 = vsyncpa [#allocation4], 1 }
0x15a1   :  { %2402 = vsyncpa [#allocation4 + $0x1], 1 }
0x15a2   :  { %2403 = vsyncpa [#allocation6], 1 }

</bundles_post_ra>
